<compile_context>
chip_gen: v7x
topology: tpu7x:2x2x1
jax: 0.10.0
libtpu: 0.0.40
codegen_flags: <defaults>
</compile_context>

<pallas_src>
import functools

import jax
import jax.numpy as jnp
from jax import lax
from jax.experimental import pallas as pl
from jax.experimental.pallas import tpu as pltpu


# ----------------------------------------------------------------------------
# Fused kernel:
#   Z0 = X @ W1
#   Z  = (1-alpha) * (A_norm @ Z) + alpha * Z0      (k times, Z resident in VMEM)
#   O  = relu(Z + b1) @ W2 + b2                     (all widths padded to 128)
# ----------------------------------------------------------------------------
def _fused_appnp_mlp_kernel(a_ref, x_ref, w1_ref, b1_ref, w2_ref, b2_ref,
                            o_ref, z_ref, az_ref, *, k, alpha):
    # Fold W1 into the propagation (propagation is linear in the features).
    z0 = jnp.dot(x_ref[...], w1_ref[...], preferred_element_type=jnp.float32)
    z_ref[...] = z0
    az_ref[...] = jnp.float32(alpha) * z0          # hoisted: reused every step
    one_m_alpha = jnp.float32(1.0 - alpha)

    # k-step APPNP propagation; carry lives in VMEM scratch, loop fully
    # unrolled so the LLO scheduler overlaps MXU pushes with the VPU epilogue.
    def body(_, carry):
        agg = jnp.dot(a_ref[...], z_ref[...], preferred_element_type=jnp.float32)
        z_ref[...] = one_m_alpha * agg + az_ref[...]
        return carry

    lax.fori_loop(0, k, body, 0, unroll=True)

    # MLP epilogue (dropout = identity in eval): relu(Z + b1) @ W2 + b2.
    h = jnp.maximum(z_ref[...] + b1_ref[...], 0.0)
    o_ref[...] = (
        jnp.dot(h, w2_ref[...], preferred_element_type=jnp.float32) + b2_ref[...]
    )


def _pad_to(n, m):
    """Round up to a multiple of m (at least m)."""
    return max(m, ((n + m - 1) // m) * m)


# ----------------------------------------------------------------------------
# Full forward: CustomDecoupledAPPNP.forward(graph, x) with twp=False
# ----------------------------------------------------------------------------
def custom_decoupled_appnp_forward(a_norm, x, params, *, k, alpha):
    n, d = x.shape
    w1, b1, w2, b2 = params["w1"], params["b1"], params["w2"], params["b2"]
    h_dim = w1.shape[1]
    n_cls = w2.shape[1]

    # Pad node count to a sublane multiple and every feature width to 128
    # lanes.  Exact: padded rows/columns are zero and stay zero through the
    # linear propagation; padded logits rows / columns are sliced off below.
    npad = _pad_to(n, 8)
    dp = _pad_to(d, 128)
    hp = _pad_to(h_dim, 128)
    cp = _pad_to(n_cls, 128)

    a_p = jnp.zeros((npad, npad), jnp.float32).at[:n, :n].set(a_norm)
    x_p = jnp.zeros((npad, dp), jnp.float32).at[:n, :d].set(x)
    w1p = jnp.zeros((dp, hp), jnp.float32).at[:d, :h_dim].set(w1)
    b1p = jnp.zeros((1, hp), jnp.float32).at[:, :h_dim].set(b1)
    w2p = jnp.zeros((hp, cp), jnp.float32).at[:h_dim, :n_cls].set(w2)
    b2p = jnp.zeros((1, cp), jnp.float32).at[:, :n_cls].set(b2)

    kernel = functools.partial(_fused_appnp_mlp_kernel, k=k, alpha=alpha)

    # TODO(synk): for large graphs (N^2 * 4 bytes > VMEM) this needs a
    # row-tiled / sparse (scalar-prefetch + gather DMA) propagation with the
    # k steps as an outer sequential sweep; dense-A single-block is fine here.
    out_padded = pl.pallas_call(
        kernel,
        out_shape=jax.ShapeDtypeStruct((npad, cp), jnp.float32),
        in_specs=[
            pl.BlockSpec((npad, npad), lambda: (0, 0)),  # A_norm (padded)
            pl.BlockSpec((npad, dp), lambda: (0, 0)),    # X (padded)
            pl.BlockSpec((dp, hp), lambda: (0, 0)),      # W1 (padded)
            pl.BlockSpec((1, hp), lambda: (0, 0)),       # b1 (padded)
            pl.BlockSpec((hp, cp), lambda: (0, 0)),      # W2 (padded)
            pl.BlockSpec((1, cp), lambda: (0, 0)),       # b2 (padded)
        ],
        out_specs=pl.BlockSpec((npad, cp), lambda: (0, 0)),
        scratch_shapes=[
            pltpu.VMEM((npad, hp), jnp.float32),         # Z carry
            pltpu.VMEM((npad, hp), jnp.float32),         # alpha * Z0
        ],
        compiler_params=pltpu.CompilerParams(
            vmem_limit_bytes=32 * 1024 * 1024,
        ),
    )(a_p, x_p, w1p, b1p, w2p, b2p)

    logits = out_padded[:n, :n_cls]
    e_list = []  # twp=False path: no edge attention computed
    # TODO(synk): twp=True branch (edge_softmax over DGL graph edges) not implemented.
    return logits, e_list


def _symmetric_norm_adj(adj):
    """DGL APPNPConv-style symmetric normalization: D^{-1/2} A D^{-1/2}."""
    degs = jnp.clip(jnp.sum(adj, axis=1), min=1.0)
    norm = degs ** -0.5
    return norm[:, None] * adj * norm[None, :]


if __name__ == "__main__":
    # Small shapes consistent with the module:
    #   args.d_data = 32, h_dims = [64], args.n_cls = 16, k = 10, alpha = 0.1
    N = 128          # number of graph nodes
    D_DATA = 32
    H_DIM = 64
    N_CLS = 16
    K = 10
    ALPHA = 0.1

    key = jax.random.PRNGKey(0)
    k_adj, k_x, k_w1, k_b1, k_w2, k_b2 = jax.random.split(key, 6)

    # Random sparse-ish symmetric adjacency (no self loops), then normalize.
    adj = jax.random.bernoulli(k_adj, 0.05, (N, N)).astype(jnp.float32)
    adj = jnp.maximum(adj, adj.T)
    adj = adj * (1.0 - jnp.eye(N, dtype=jnp.float32))
    a_norm = _symmetric_norm_adj(adj)

    # Node features.
    x = jax.random.normal(k_x, (N, D_DATA), dtype=jnp.float32)

    # Deterministic parameter init (nn.Linear-like uniform bounds).
    def linear_init(kw, kb, fan_in, fan_out):
        bound = 1.0 / (fan_in ** 0.5)
        w = jax.random.uniform(kw, (fan_in, fan_out), jnp.float32, -bound, bound)
        b = jax.random.uniform(kb, (1, fan_out), jnp.float32, -bound, bound)
        return w, b

    w1, b1 = linear_init(k_w1, k_b1, D_DATA, H_DIM)
    w2, b2 = linear_init(k_w2, k_b2, H_DIM, N_CLS)
    params = {"w1": w1, "b1": b1, "w2": w2, "b2": b2}

    logits, e_list = custom_decoupled_appnp_forward(
        a_norm, x, params, k=K, alpha=ALPHA
    )
    logits = jax.block_until_ready(logits)

    # Reference check in plain JAX (original op ordering: propagate X, then W1).
    h_ref = x
    for _ in range(K):
        h_ref = (1.0 - ALPHA) * (a_norm @ h_ref) + ALPHA * x
    ref = jnp.maximum(h_ref @ w1 + b1, 0.0) @ w2 + b2

    assert logits.shape == (N, N_CLS)
    assert e_list == []
    # W1 is folded into the propagation inside the kernel (exact up to f32
    # matmul reassociation), so allow a slightly looser tolerance.
    assert jnp.allclose(logits, ref, atol=1e-3, rtol=1e-3)

    print("KERNEL_OK")
</pallas_src>

<mosaic_0001>
module attributes {stable_mosaic.version = 11 : i64} {
  func.func @_fused_appnp_mlp_kernel(%arg0: memref<128x128xf32, #tpu.memory_space<vmem>>, %arg1: memref<128x128xf32, #tpu.memory_space<vmem>>, %arg2: memref<128x128xf32, #tpu.memory_space<vmem>>, %arg3: memref<1x128xf32, #tpu.memory_space<vmem>>, %arg4: memref<128x128xf32, #tpu.memory_space<vmem>>, %arg5: memref<1x128xf32, #tpu.memory_space<vmem>>, %arg6: memref<128x128xf32, #tpu.memory_space<vmem>>, %arg7: memref<128x128xf32, #tpu.memory_space<vmem>>, %arg8: memref<128x128xf32, #tpu.memory_space<vmem>>) attributes {dimension_semantics = [], scalar_prefetch = 0 : i64, scratch_operands = 2 : i64, tpu.core_type = #tpu.core_type<tc>} {
    %c0 = arith.constant 0 : index
    %c0_0 = arith.constant 0 : index
    %0 = vector.load %arg1[%c0, %c0_0] : memref<128x128xf32, #tpu.memory_space<vmem>>, vector<128x128xf32>
    %c0_1 = arith.constant 0 : index
    %c0_2 = arith.constant 0 : index
    %1 = vector.load %arg2[%c0_1, %c0_2] : memref<128x128xf32, #tpu.memory_space<vmem>>, vector<128x128xf32>
    %cst = arith.constant dense<0.000000e+00> : vector<128x128xf32>
    %2 = tpu.matmul %0, %1, %cst {dimension_numbers = #tpu.dot_dimension_numbers<[1], [0], [0], [1], [0, 0, 1, 1], [], []>} : vector<128x128xf32>, vector<128x128xf32>, vector<128x128xf32> -> vector<128x128xf32>
    %c0_3 = arith.constant 0 : index
    %c0_4 = arith.constant 0 : index
    %3 = vector.load %arg7[%c0_3, %c0_4] : memref<128x128xf32, #tpu.memory_space<vmem>>, vector<128x128xf32>
    tpu.vector_store %arg7[%c0_3, %c0_4], %2 {strides = array<i32>} : memref<128x128xf32, #tpu.memory_space<vmem>>, vector<128x128xf32>,
    %cst_5 = arith.constant 1.000000e-01 : f32
    %4 = vector.broadcast %cst_5 : f32 to vector<128x128xf32>
    %5 = arith.mulf %4, %2 : vector<128x128xf32>
    %c0_6 = arith.constant 0 : index
    %c0_7 = arith.constant 0 : index
    %6 = vector.load %arg8[%c0_6, %c0_7] : memref<128x128xf32, #tpu.memory_space<vmem>>, vector<128x128xf32>
    tpu.vector_store %arg8[%c0_6, %c0_7], %5 {strides = array<i32>} : memref<128x128xf32, #tpu.memory_space<vmem>>, vector<128x128xf32>,
    %cst_8 = arith.constant 0.899999976 : f32
    %c0_i32 = arith.constant 0 : i32
    %c0_9 = arith.constant 0 : index
    %c0_10 = arith.constant 0 : index
    %7 = vector.load %arg0[%c0_9, %c0_10] : memref<128x128xf32, #tpu.memory_space<vmem>>, vector<128x128xf32>
    %c0_11 = arith.constant 0 : index
    %c0_12 = arith.constant 0 : index
    %8 = vector.load %arg7[%c0_11, %c0_12] : memref<128x128xf32, #tpu.memory_space<vmem>>, vector<128x128xf32>
    %cst_13 = arith.constant dense<0.000000e+00> : vector<128x128xf32>
    %9 = tpu.matmul %7, %8, %cst_13 {dimension_numbers = #tpu.dot_dimension_numbers<[1], [0], [0], [1], [0, 0, 1, 1], [], []>} : vector<128x128xf32>, vector<128x128xf32>, vector<128x128xf32> -> vector<128x128xf32>
    %10 = vector.broadcast %cst_8 : f32 to vector<128x128xf32>
    %11 = arith.mulf %10, %9 : vector<128x128xf32>
    %c0_14 = arith.constant 0 : index
    %c0_15 = arith.constant 0 : index
    %12 = vector.load %arg8[%c0_14, %c0_15] : memref<128x128xf32, #tpu.memory_space<vmem>>, vector<128x128xf32>
    %13 = arith.addf %11, %12 : vector<128x128xf32>
    %c0_16 = arith.constant 0 : index
    %c0_17 = arith.constant 0 : index
    %14 = vector.load %arg7[%c0_16, %c0_17] : memref<128x128xf32, #tpu.memory_space<vmem>>, vector<128x128xf32>
    tpu.vector_store %arg7[%c0_16, %c0_17], %13 {strides = array<i32>} : memref<128x128xf32, #tpu.memory_space<vmem>>, vector<128x128xf32>,
    %c1_i32 = arith.constant 1 : i32
    %c0_18 = arith.constant 0 : index
    %c0_19 = arith.constant 0 : index
    %15 = vector.load %arg0[%c0_18, %c0_19] : memref<128x128xf32, #tpu.memory_space<vmem>>, vector<128x128xf32>
    %c0_20 = arith.constant 0 : index
    %c0_21 = arith.constant 0 : index
    %16 = vector.load %arg7[%c0_20, %c0_21] : memref<128x128xf32, #tpu.memory_space<vmem>>, vector<128x128xf32>
    %cst_22 = arith.constant dense<0.000000e+00> : vector<128x128xf32>
    %17 = tpu.matmul %15, %16, %cst_22 {dimension_numbers = #tpu.dot_dimension_numbers<[1], [0], [0], [1], [0, 0, 1, 1], [], []>} : vector<128x128xf32>, vector<128x128xf32>, vector<128x128xf32> -> vector<128x128xf32>
    %18 = vector.broadcast %cst_8 : f32 to vector<128x128xf32>
    %19 = arith.mulf %18, %17 : vector<128x128xf32>
    %c0_23 = arith.constant 0 : index
    %c0_24 = arith.constant 0 : index
    %20 = vector.load %arg8[%c0_23, %c0_24] : memref<128x128xf32, #tpu.memory_space<vmem>>, vector<128x128xf32>
    %21 = arith.addf %19, %20 : vector<128x128xf32>
    %c0_25 = arith.constant 0 : index
    %c0_26 = arith.constant 0 : index
    %22 = vector.load %arg7[%c0_25, %c0_26] : memref<128x128xf32, #tpu.memory_space<vmem>>, vector<128x128xf32>
    tpu.vector_store %arg7[%c0_25, %c0_26], %21 {strides = array<i32>} : memref<128x128xf32, #tpu.memory_space<vmem>>, vector<128x128xf32>,
    %c2_i32 = arith.constant 2 : i32
    %c0_27 = arith.constant 0 : index
    %c0_28 = arith.constant 0 : index
    %23 = vector.load %arg0[%c0_27, %c0_28] : memref<128x128xf32, #tpu.memory_space<vmem>>, vector<128x128xf32>
    %c0_29 = arith.constant 0 : index
    %c0_30 = arith.constant 0 : index
    %24 = vector.load %arg7[%c0_29, %c0_30] : memref<128x128xf32, #tpu.memory_space<vmem>>, vector<128x128xf32>
    %cst_31 = arith.constant dense<0.000000e+00> : vector<128x128xf32>
    %25 = tpu.matmul %23, %24, %cst_31 {dimension_numbers = #tpu.dot_dimension_numbers<[1], [0], [0], [1], [0, 0, 1, 1], [], []>} : vector<128x128xf32>, vector<128x128xf32>, vector<128x128xf32> -> vector<128x128xf32>
    %26 = vector.broadcast %cst_8 : f32 to vector<128x128xf32>
    %27 = arith.mulf %26, %25 : vector<128x128xf32>
    %c0_32 = arith.constant 0 : index
    %c0_33 = arith.constant 0 : index
    %28 = vector.load %arg8[%c0_32, %c0_33] : memref<128x128xf32, #tpu.memory_space<vmem>>, vector<128x128xf32>
    %29 = arith.addf %27, %28 : vector<128x128xf32>
    %c0_34 = arith.constant 0 : index
    %c0_35 = arith.constant 0 : index
    %30 = vector.load %arg7[%c0_34, %c0_35] : memref<128x128xf32, #tpu.memory_space<vmem>>, vector<128x128xf32>
    tpu.vector_store %arg7[%c0_34, %c0_35], %29 {strides = array<i32>} : memref<128x128xf32, #tpu.memory_space<vmem>>, vector<128x128xf32>,
    %c3_i32 = arith.constant 3 : i32
    %c0_36 = arith.constant 0 : index
    %c0_37 = arith.constant 0 : index
    %31 = vector.load %arg0[%c0_36, %c0_37] : memref<128x128xf32, #tpu.memory_space<vmem>>, vector<128x128xf32>
    %c0_38 = arith.constant 0 : index
    %c0_39 = arith.constant 0 : index
    %32 = vector.load %arg7[%c0_38, %c0_39] : memref<128x128xf32, #tpu.memory_space<vmem>>, vector<128x128xf32>
    %cst_40 = arith.constant dense<0.000000e+00> : vector<128x128xf32>
    %33 = tpu.matmul %31, %32, %cst_40 {dimension_numbers = #tpu.dot_dimension_numbers<[1], [0], [0], [1], [0, 0, 1, 1], [], []>} : vector<128x128xf32>, vector<128x128xf32>, vector<128x128xf32> -> vector<128x128xf32>
    %34 = vector.broadcast %cst_8 : f32 to vector<128x128xf32>
    %35 = arith.mulf %34, %33 : vector<128x128xf32>
    %c0_41 = arith.constant 0 : index
    %c0_42 = arith.constant 0 : index
    %36 = vector.load %arg8[%c0_41, %c0_42] : memref<128x128xf32, #tpu.memory_space<vmem>>, vector<128x128xf32>
    %37 = arith.addf %35, %36 : vector<128x128xf32>
    %c0_43 = arith.constant 0 : index
    %c0_44 = arith.constant 0 : index
    %38 = vector.load %arg7[%c0_43, %c0_44] : memref<128x128xf32, #tpu.memory_space<vmem>>, vector<128x128xf32>
    tpu.vector_store %arg7[%c0_43, %c0_44], %37 {strides = array<i32>} : memref<128x128xf32, #tpu.memory_space<vmem>>, vector<128x128xf32>,
    %c4_i32 = arith.constant 4 : i32
    %c0_45 = arith.constant 0 : index
    %c0_46 = arith.constant 0 : index
    %39 = vector.load %arg0[%c0_45, %c0_46] : memref<128x128xf32, #tpu.memory_space<vmem>>, vector<128x128xf32>
    %c0_47 = arith.constant 0 : index
    %c0_48 = arith.constant 0 : index
    %40 = vector.load %arg7[%c0_47, %c0_48] : memref<128x128xf32, #tpu.memory_space<vmem>>, vector<128x128xf32>
    %cst_49 = arith.constant dense<0.000000e+00> : vector<128x128xf32>
    %41 = tpu.matmul %39, %40, %cst_49 {dimension_numbers = #tpu.dot_dimension_numbers<[1], [0], [0], [1], [0, 0, 1, 1], [], []>} : vector<128x128xf32>, vector<128x128xf32>, vector<128x128xf32> -> vector<128x128xf32>
    %42 = vector.broadcast %cst_8 : f32 to vector<128x128xf32>
    %43 = arith.mulf %42, %41 : vector<128x128xf32>
    %c0_50 = arith.constant 0 : index
    %c0_51 = arith.constant 0 : index
    %44 = vector.load %arg8[%c0_50, %c0_51] : memref<128x128xf32, #tpu.memory_space<vmem>>, vector<128x128xf32>
    %45 = arith.addf %43, %44 : vector<128x128xf32>
    %c0_52 = arith.constant 0 : index
    %c0_53 = arith.constant 0 : index
    %46 = vector.load %arg7[%c0_52, %c0_53] : memref<128x128xf32, #tpu.memory_space<vmem>>, vector<128x128xf32>
    tpu.vector_store %arg7[%c0_52, %c0_53], %45 {strides = array<i32>} : memref<128x128xf32, #tpu.memory_space<vmem>>, vector<128x128xf32>,
    %c5_i32 = arith.constant 5 : i32
    %c0_54 = arith.constant 0 : index
    %c0_55 = arith.constant 0 : index
    %47 = vector.load %arg0[%c0_54, %c0_55] : memref<128x128xf32, #tpu.memory_space<vmem>>, vector<128x128xf32>
    %c0_56 = arith.constant 0 : index
    %c0_57 = arith.constant 0 : index
    %48 = vector.load %arg7[%c0_56, %c0_57] : memref<128x128xf32, #tpu.memory_space<vmem>>, vector<128x128xf32>
    %cst_58 = arith.constant dense<0.000000e+00> : vector<128x128xf32>
    %49 = tpu.matmul %47, %48, %cst_58 {dimension_numbers = #tpu.dot_dimension_numbers<[1], [0], [0], [1], [0, 0, 1, 1], [], []>} : vector<128x128xf32>, vector<128x128xf32>, vector<128x128xf32> -> vector<128x128xf32>
    %50 = vector.broadcast %cst_8 : f32 to vector<128x128xf32>
    %51 = arith.mulf %50, %49 : vector<128x128xf32>
    %c0_59 = arith.constant 0 : index
    %c0_60 = arith.constant 0 : index
    %52 = vector.load %arg8[%c0_59, %c0_60] : memref<128x128xf32, #tpu.memory_space<vmem>>, vector<128x128xf32>
    %53 = arith.addf %51, %52 : vector<128x128xf32>
    %c0_61 = arith.constant 0 : index
    %c0_62 = arith.constant 0 : index
    %54 = vector.load %arg7[%c0_61, %c0_62] : memref<128x128xf32, #tpu.memory_space<vmem>>, vector<128x128xf32>
    tpu.vector_store %arg7[%c0_61, %c0_62], %53 {strides = array<i32>} : memref<128x128xf32, #tpu.memory_space<vmem>>, vector<128x128xf32>,
    %c6_i32 = arith.constant 6 : i32
    %c0_63 = arith.constant 0 : index
    %c0_64 = arith.constant 0 : index
    %55 = vector.load %arg0[%c0_63, %c0_64] : memref<128x128xf32, #tpu.memory_space<vmem>>, vector<128x128xf32>
    %c0_65 = arith.constant 0 : index
    %c0_66 = arith.constant 0 : index
    %56 = vector.load %arg7[%c0_65, %c0_66] : memref<128x128xf32, #tpu.memory_space<vmem>>, vector<128x128xf32>
    %cst_67 = arith.constant dense<0.000000e+00> : vector<128x128xf32>
    %57 = tpu.matmul %55, %56, %cst_67 {dimension_numbers = #tpu.dot_dimension_numbers<[1], [0], [0], [1], [0, 0, 1, 1], [], []>} : vector<128x128xf32>, vector<128x128xf32>, vector<128x128xf32> -> vector<128x128xf32>
    %58 = vector.broadcast %cst_8 : f32 to vector<128x128xf32>
    %59 = arith.mulf %58, %57 : vector<128x128xf32>
    %c0_68 = arith.constant 0 : index
    %c0_69 = arith.constant 0 : index
    %60 = vector.load %arg8[%c0_68, %c0_69] : memref<128x128xf32, #tpu.memory_space<vmem>>, vector<128x128xf32>
    %61 = arith.addf %59, %60 : vector<128x128xf32>
    %c0_70 = arith.constant 0 : index
    %c0_71 = arith.constant 0 : index
    %62 = vector.load %arg7[%c0_70, %c0_71] : memref<128x128xf32, #tpu.memory_space<vmem>>, vector<128x128xf32>
    tpu.vector_store %arg7[%c0_70, %c0_71], %61 {strides = array<i32>} : memref<128x128xf32, #tpu.memory_space<vmem>>, vector<128x128xf32>,
    %c7_i32 = arith.constant 7 : i32
    %c0_72 = arith.constant 0 : index
    %c0_73 = arith.constant 0 : index
    %63 = vector.load %arg0[%c0_72, %c0_73] : memref<128x128xf32, #tpu.memory_space<vmem>>, vector<128x128xf32>
    %c0_74 = arith.constant 0 : index
    %c0_75 = arith.constant 0 : index
    %64 = vector.load %arg7[%c0_74, %c0_75] : memref<128x128xf32, #tpu.memory_space<vmem>>, vector<128x128xf32>
    %cst_76 = arith.constant dense<0.000000e+00> : vector<128x128xf32>
    %65 = tpu.matmul %63, %64, %cst_76 {dimension_numbers = #tpu.dot_dimension_numbers<[1], [0], [0], [1], [0, 0, 1, 1], [], []>} : vector<128x128xf32>, vector<128x128xf32>, vector<128x128xf32> -> vector<128x128xf32>
    %66 = vector.broadcast %cst_8 : f32 to vector<128x128xf32>
    %67 = arith.mulf %66, %65 : vector<128x128xf32>
    %c0_77 = arith.constant 0 : index
    %c0_78 = arith.constant 0 : index
    %68 = vector.load %arg8[%c0_77, %c0_78] : memref<128x128xf32, #tpu.memory_space<vmem>>, vector<128x128xf32>
    %69 = arith.addf %67, %68 : vector<128x128xf32>
    %c0_79 = arith.constant 0 : index
    %c0_80 = arith.constant 0 : index
    %70 = vector.load %arg7[%c0_79, %c0_80] : memref<128x128xf32, #tpu.memory_space<vmem>>, vector<128x128xf32>
    tpu.vector_store %arg7[%c0_79, %c0_80], %69 {strides = array<i32>} : memref<128x128xf32, #tpu.memory_space<vmem>>, vector<128x128xf32>,
    %c8_i32 = arith.constant 8 : i32
    %c0_81 = arith.constant 0 : index
    %c0_82 = arith.constant 0 : index
    %71 = vector.load %arg0[%c0_81, %c0_82] : memref<128x128xf32, #tpu.memory_space<vmem>>, vector<128x128xf32>
    %c0_83 = arith.constant 0 : index
    %c0_84 = arith.constant 0 : index
    %72 = vector.load %arg7[%c0_83, %c0_84] : memref<128x128xf32, #tpu.memory_space<vmem>>, vector<128x128xf32>
    %cst_85 = arith.constant dense<0.000000e+00> : vector<128x128xf32>
    %73 = tpu.matmul %71, %72, %cst_85 {dimension_numbers = #tpu.dot_dimension_numbers<[1], [0], [0], [1], [0, 0, 1, 1], [], []>} : vector<128x128xf32>, vector<128x128xf32>, vector<128x128xf32> -> vector<128x128xf32>
    %74 = vector.broadcast %cst_8 : f32 to vector<128x128xf32>
    %75 = arith.mulf %74, %73 : vector<128x128xf32>
    %c0_86 = arith.constant 0 : index
    %c0_87 = arith.constant 0 : index
    %76 = vector.load %arg8[%c0_86, %c0_87] : memref<128x128xf32, #tpu.memory_space<vmem>>, vector<128x128xf32>
    %77 = arith.addf %75, %76 : vector<128x128xf32>
    %c0_88 = arith.constant 0 : index
    %c0_89 = arith.constant 0 : index
    %78 = vector.load %arg7[%c0_88, %c0_89] : memref<128x128xf32, #tpu.memory_space<vmem>>, vector<128x128xf32>
    tpu.vector_store %arg7[%c0_88, %c0_89], %77 {strides = array<i32>} : memref<128x128xf32, #tpu.memory_space<vmem>>, vector<128x128xf32>,
    %c9_i32 = arith.constant 9 : i32
    %c0_90 = arith.constant 0 : index
    %c0_91 = arith.constant 0 : index
    %79 = vector.load %arg0[%c0_90, %c0_91] : memref<128x128xf32, #tpu.memory_space<vmem>>, vector<128x128xf32>
    %c0_92 = arith.constant 0 : index
    %c0_93 = arith.constant 0 : index
    %80 = vector.load %arg7[%c0_92, %c0_93] : memref<128x128xf32, #tpu.memory_space<vmem>>, vector<128x128xf32>
    %cst_94 = arith.constant dense<0.000000e+00> : vector<128x128xf32>
    %81 = tpu.matmul %79, %80, %cst_94 {dimension_numbers = #tpu.dot_dimension_numbers<[1], [0], [0], [1], [0, 0, 1, 1], [], []>} : vector<128x128xf32>, vector<128x128xf32>, vector<128x128xf32> -> vector<128x128xf32>
    %82 = vector.broadcast %cst_8 : f32 to vector<128x128xf32>
    %83 = arith.mulf %82, %81 : vector<128x128xf32>
    %c0_95 = arith.constant 0 : index
    %c0_96 = arith.constant 0 : index
    %84 = vector.load %arg8[%c0_95, %c0_96] : memref<128x128xf32, #tpu.memory_space<vmem>>, vector<128x128xf32>
    %85 = arith.addf %83, %84 : vector<128x128xf32>
    %c0_97 = arith.constant 0 : index
    %c0_98 = arith.constant 0 : index
    %86 = vector.load %arg7[%c0_97, %c0_98] : memref<128x128xf32, #tpu.memory_space<vmem>>, vector<128x128xf32>
    tpu.vector_store %arg7[%c0_97, %c0_98], %85 {strides = array<i32>} : memref<128x128xf32, #tpu.memory_space<vmem>>, vector<128x128xf32>,
    %c0_99 = arith.constant 0 : index
    %c0_100 = arith.constant 0 : index
    %87 = vector.load %arg7[%c0_99, %c0_100] : memref<128x128xf32, #tpu.memory_space<vmem>>, vector<128x128xf32>
    %c0_101 = arith.constant 0 : index
    %c0_102 = arith.constant 0 : index
    %88 = vector.load %arg3[%c0_101, %c0_102] : memref<1x128xf32, #tpu.memory_space<vmem>>, vector<1x128xf32>
    %89 = vector.broadcast %88 : vector<1x128xf32> to vector<128x128xf32>
    %90 = arith.addf %87, %89 : vector<128x128xf32>
    %cst_103 = arith.constant 0.000000e+00 : f32
    %91 = vector.broadcast %cst_103 : f32 to vector<128x128xf32>
    %92 = arith.maximumf %90, %91 : vector<128x128xf32>
    %c0_104 = arith.constant 0 : index
    %c0_105 = arith.constant 0 : index
    %93 = vector.load %arg4[%c0_104, %c0_105] : memref<128x128xf32, #tpu.memory_space<vmem>>, vector<128x128xf32>
    %cst_106 = arith.constant dense<0.000000e+00> : vector<128x128xf32>
    %94 = tpu.matmul %92, %93, %cst_106 {dimension_numbers = #tpu.dot_dimension_numbers<[1], [0], [0], [1], [0, 0, 1, 1], [], []>} : vector<128x128xf32>, vector<128x128xf32>, vector<128x128xf32> -> vector<128x128xf32>
    %c0_107 = arith.constant 0 : index
    %c0_108 = arith.constant 0 : index
    %95 = vector.load %arg5[%c0_107, %c0_108] : memref<1x128xf32, #tpu.memory_space<vmem>>, vector<1x128xf32>
    %96 = vector.broadcast %95 : vector<1x128xf32> to vector<128x128xf32>
    %97 = arith.addf %94, %96 : vector<128x128xf32>
    %c0_109 = arith.constant 0 : index
    %c0_110 = arith.constant 0 : index
    %98 = vector.load %arg6[%c0_109, %c0_110] : memref<128x128xf32, #tpu.memory_space<vmem>>, vector<128x128xf32>
    tpu.vector_store %arg6[%c0_109, %c0_110], %97 {strides = array<i32>} : memref<128x128xf32, #tpu.memory_space<vmem>>, vector<128x128xf32>,
    return
  }
}

</mosaic_0001>

<bundles_post_ra>
// kernel: tpu_custom_call.1
= control target key start
LH: loop header
LB: loop body
LE: loop exit
PB: predicated region body
PF: predicated region fallthrough
CT: control target
= control target key end

     0   :  { %11 = vsyncpa [#allocation5], 0  ;;  %s5174_s0 = inlined_call_operand.hbm [shape: f32[128,128], index: 0, kind: input, shape index: {}]   ;;  %s5175_s1 = inlined_call_operand.hbm [shape: f32[128,128], index: 1, kind: input, shape index: {}]   ;;  %s5176_s2 = inlined_call_operand.hbm [shape: f32[128,128], index: 2, kind: input, shape index: {}]   ;;  %s5177_s3 = inlined_call_operand.vmem [shape: f32[1,128], index: 3, kind: input, shape index: {}]   ;;  %s5178_s4 = inlined_call_operand.hbm [shape: f32[128,128], index: 4, kind: input, shape index: {}]   ;;  %s5179_s5 = inlined_call_operand.vmem [shape: f32[1,128], index: 5, kind: input, shape index: {}]   ;;  %s5180_s6 = inlined_call_operand.hbm [shape: f32[128,128], index: 6, kind: output, shape index: {}]  }
   0x1   :  { %12 = vsyncpa [#allocation8], 0 }
   0x2   :  { %13 = vsyncpa [#allocation11], 0 }
   0x3   :  { %14 = vsyncpa [#allocation6], 0  ;;  %s4539_s21 = smov [#allocation7]   ;;  %s4540_s23 = smov [#allocation4]  }
   0x4   :  { %s32_s22 = sshll.u32 %s4539_s21, 4  ;;  %s20_s24 = sshll.u32 %s4540_s23, 4  ;;  %s33_s22 = int_to_ptr.vmem [resolvable:$true] %s32_s22  ;;  %s4581_s24 = int_to_ptr.vmem [resolvable:$true] %s20_s24 }
   0x5   :  { %s4421_s27 = scalar_lea.hbm %s5175_s1, 2048 }
   0x6   :  { %p4422_p0 = scmp.ne.s32.totalorder %s5175_s1, %s4421_s27  ;;  %p4425_p1 = scmp.lt.u32.totalorder %s4421_s27, %s5175_s1 }
   0x8   :  { %p4427_p2 = pnand %p4425_p1, %p4422_p0 }
   0xa   :  { %4430 = shalt.err (!%p4427_p2)
}
   0xb   :  { %s4431_s8 = scalar_lea.vmem %s33_s22, 2048  ;;  %p4436_p4 = scmp.lt.s32.totalorder %s33_s22, %s33_s22 }
   0xc   :  { %p4432_p3 = scmp.ne.s32.totalorder %s33_s22, %s4431_s8  ;;  %p4437_p5 = scmp.lt.s32.totalorder %s4431_s8, %s4431_s8 }
   0xe   :  { %p4438_p6 = por %p4437_p5, %p4436_p4 }
  0x10   :  { %p4439_p7 = pnand %p4438_p6, %p4432_p3 }
  0x12   :  { %4442 = shalt.err (!%p4439_p7)
}
  0x13   :  { %s4541_s9 = smov 128   ;;  %s4542_s10 = smov 8  }
  0x14   :  { %38 = dma.hbm_to_vmem [thread:$0]  %s5175_s1, 2048, %s33_s22, [#allocation8], %s4541_s9, %s4541_s9, %s4542_s10  }
  0x15   :  { %s4443_s15 = scalar_lea.hbm %s5174_s0, 2048 }
  0x16   :  { %p4444_p8 = scmp.ne.s32.totalorder %s5174_s0, %s4443_s15  ;;  %p4447_p9 = scmp.lt.u32.totalorder %s4443_s15, %s5174_s0 }
  0x18   :  { %p4449_p10 = pnand %p4447_p9, %p4444_p8 }
  0x1a   :  { %4452 = shalt.err (!%p4449_p10)
}
  0x1b   :  { %s4453_s20 = scalar_lea.vmem %s4581_s24, 2048  ;;  %p4458_p12 = scmp.lt.s32.totalorder %s4581_s24, %s4581_s24 }
  0x1c   :  { %p4454_p11 = scmp.ne.s32.totalorder %s4581_s24, %s4453_s20  ;;  %p4459_p13 = scmp.lt.s32.totalorder %s4453_s20, %s4453_s20 }
  0x1e   :  { %p4460_p0 = por %p4459_p13, %p4458_p12 }
  0x20   :  { %p4461_p1 = pnand %p4460_p0, %p4454_p11 }
  0x22   :  { %4464 = shalt.err (!%p4461_p1)
}
  0x23   :  { %26 = dma.hbm_to_vmem [thread:$0]  %s5174_s0, 2048, %s4581_s24, [#allocation5], %s4541_s9, %s4541_s9, %s4542_s10  }
  0x24   :  { %s4543_s22 = smov [#allocation9]   ;;  %s4544_s25 = smov [#allocation10]  }
  0x25   :  { %s44_s23 = sshll.u32 %s4543_s22, 4  ;;  %s58_s26 = sshll.u32 %s4544_s25, 4  ;;  %s45_s23 = int_to_ptr.vmem [resolvable:$true] %s44_s23  ;;  %s4618_s26 = int_to_ptr.vmem [resolvable:$true] %s58_s26 }
  0x26   :  { %s4465_s29 = scalar_lea.hbm %s5176_s2, 2048 }
  0x27   :  { %p4466_p2 = scmp.ne.s32.totalorder %s5176_s2, %s4465_s29  ;;  %p4469_p3 = scmp.lt.u32.totalorder %s4465_s29, %s5176_s2 }
  0x29   :  { %p4471_p4 = pnand %p4469_p3, %p4466_p2 }
  0x2b   :  { %4474 = shalt.err (!%p4471_p4)
}
  0x2c   :  { %s4475_s0 = scalar_lea.vmem %s45_s23, 2048  ;;  %p4480_p6 = scmp.lt.s32.totalorder %s45_s23, %s45_s23 }
  0x2d   :  { %p4476_p5 = scmp.ne.s32.totalorder %s45_s23, %s4475_s0  ;;  %p4481_p7 = scmp.lt.s32.totalorder %s4475_s0, %s4475_s0 }
  0x2f   :  { %p4482_p8 = por %p4481_p7, %p4480_p6 }
  0x31   :  { %p4483_p9 = pnand %p4482_p8, %p4476_p5 }
  0x33   :  { %4486 = shalt.err (!%p4483_p9)
}
  0x34   :  { %50 = dma.hbm_to_vmem [thread:$0]  %s5176_s2, 2048, %s45_s23, [#allocation8], %s4541_s9, %s4541_s9, %s4542_s10  }
  0x35   :  { %s4487_s15 = scalar_lea.hbm %s5178_s4, 2048 }
  0x36   :  { %p4488_p10 = scmp.ne.s32.totalorder %s5178_s4, %s4487_s15  ;;  %p4491_p11 = scmp.lt.u32.totalorder %s4487_s15, %s5178_s4 }
  0x38   :  { %p4493_p12 = pnand %p4491_p11, %p4488_p10 }
  0x3a   :  { %4496 = shalt.err (!%p4493_p12)
}
  0x3b   :  { %s4497_s20 = scalar_lea.vmem %s4618_s26, 2048  ;;  %p4502_p0 = scmp.lt.s32.totalorder %s4618_s26, %s4618_s26 }
  0x3c   :  { %p4498_p13 = scmp.ne.s32.totalorder %s4618_s26, %s4497_s20  ;;  %p4503_p1 = scmp.lt.s32.totalorder %s4497_s20, %s4497_s20 }
  0x3e   :  { %p4504_p2 = por %p4503_p1, %p4502_p0 }
  0x40   :  { %p4505_p3 = pnand %p4504_p2, %p4498_p13 }
  0x42   :  { %4508 = shalt.err (!%p4505_p3)
}
  0x43   :  { %64 = dma.hbm_to_vmem [thread:$0]  %s5178_s4, 2048, %s4618_s26, [#allocation11], %s4541_s9, %s4541_s9, %s4542_s10  }
  0x44   :  { %4531 = dma.done.wait [#allocation5], 2048  }
  0x45   :  { %4532 = vsyncadd [#allocation5], 4294965248 }
  0x46   :  { %4533 = dma.done.wait [#allocation8], 4096  }
  0x47   :  { %4534 = vsyncadd [#allocation8], 4294963200 }
  0x48   :  { %4535 = dma.done.wait [#allocation11], 2048  }
  0x49   :  { %4536 = vsyncadd [#allocation11], 4294965248  ;;  %v95_v0 = vld [vmem:[#allocation9] sm:$0xff]  ;;  %v96_v1 = vld [vmem:[#allocation9 + $0x8] sm:$0xff] }
  0x4a   :  { %v97_v2 = vld [vmem:[#allocation9 + $0x10] sm:$0xff]  ;;  %v4030_v3 = vpack.c.bf16 %v96_v1, %v95_v0  ;;  %v98_v4 = vld [vmem:[#allocation9 + $0x18] sm:$0xff]  ;;  %v99_v6 = vld [vmem:[#allocation9 + $0x20] sm:$0xff] }
  0x4b   :  { %v4034_v5 = vpack.c.bf16 %v98_v4, %v97_v2  ;;  %v100_v7 = vld [vmem:[#allocation9 + $0x28] sm:$0xff]  ;;  %v79_v9 = vld [vmem:[#allocation7] sm:$0xff]  ;;  %v101_v10 = vld [vmem:[#allocation9 + $0x30] sm:$0xff] }
  0x4c   :  { %4031 = vmatprep.subr.bf16.mxu0 %v4030_v3  ;;  %v4038_v8 = vpack.c.bf16 %v100_v7, %v99_v6  ;;  %v102_v11 = vld [vmem:[#allocation9 + $0x38] sm:$0xff]  ;;  %3390 = vmatprep.mubr.f32.mxu0 %v79_v9  ;;  %v103_v13 = vld [vmem:[#allocation9 + $0x40] sm:$0xff]  ;;  %v104_v14 = vld [vmem:[#allocation9 + $0x48] sm:$0xff] }
  0x4d   :  { %4033 = vmatpush3.bf16.msra.mxu0 %v4030_v3  ;;  %v4042_v12 = vpack.c.bf16 %v102_v11, %v101_v10  ;;  %v4046_v15 = vpack.c.bf16 %v104_v14, %v103_v13  ;;  %v105_v16 = vld [vmem:[#allocation9 + $0x50] sm:$0xff]  ;;  %v106_v17 = vld [vmem:[#allocation9 + $0x58] sm:$0xff]  ;;  %v107_v19 = vld [vmem:[#allocation9 + $0x60] sm:$0xff] }
  0x4e   :  { %4035 = vmatprep.subr.bf16.mxu0 %v4034_v5  ;;  %v4050_v18 = vpack.c.bf16 %v106_v17, %v105_v16  ;;  %v108_v20 = vld [vmem:[#allocation9 + $0x68] sm:$0xff]  ;;  %v109_v22 = vld [vmem:[#allocation9 + $0x70] sm:$0xff]  ;;  %v110_v23 = vld [vmem:[#allocation9 + $0x78] sm:$0xff] }
  0x4f   :  { %v4054_v21 = vpack.c.bf16 %v108_v20, %v107_v19  ;;  %v4058_v24 = vpack.c.bf16 %v110_v23, %v109_v22  ;;  %v80_v25 = vld [vmem:[#allocation7 + $0x8] sm:$0xff]  ;;  %v81_v26 = vld [vmem:[#allocation7 + $0x10] sm:$0xff]  ;;  %v82_v27 = vld [vmem:[#allocation7 + $0x18] sm:$0xff] }
  0x50   :  { %v83_v28 = vld [vmem:[#allocation7 + $0x20] sm:$0xff]  ;;  %v84_v29 = vld [vmem:[#allocation7 + $0x28] sm:$0xff]  ;;  %v85_v30 = vld [vmem:[#allocation7 + $0x30] sm:$0xff] }
  0x51   :  { %4037 = vmatpush3.bf16.msra.mxu0 %v4034_v5  ;;  %v86_v31 = vld [vmem:[#allocation7 + $0x38] sm:$0xff]  ;;  %v87_v32 = vld [vmem:[#allocation7 + $0x40] sm:$0xff]  ;;  %v88_v33 = vld [vmem:[#allocation7 + $0x48] sm:$0xff] }
  0x52   :  { %4039 = vmatprep.subr.bf16.mxu0 %v4038_v8  ;;  %v89_v34 = vld [vmem:[#allocation7 + $0x50] sm:$0xff]  ;;  %v90_v35 = vld [vmem:[#allocation7 + $0x58] sm:$0xff]  ;;  %v91_v36 = vld [vmem:[#allocation7 + $0x60] sm:$0xff] }
  0x53   :  { %v92_v37 = vld [vmem:[#allocation7 + $0x68] sm:$0xff]  ;;  %v93_v38 = vld [vmem:[#allocation7 + $0x70] sm:$0xff]  ;;  %v94_v39 = vld [vmem:[#allocation7 + $0x78] sm:$0xff] }
  0x54   :  { %v4655_v40 = vld [vmem:[#allocation4] sm:$0xff]  ;;  %v4707_v1 = vld [vmem:[#allocation4 + $0x8] sm:$0xff]  ;;  %v4709_v2 = vld [vmem:[#allocation4 + $0x10] sm:$0xff] }
  0x55   :  { %4041 = vmatpush3.bf16.msra.mxu0 %v4038_v8  ;;  %3446 = vmatprep.mubr.f32.mxu1 %v4655_v40  ;;  %v4713_v3 = vld [vmem:[#allocation4 + $0x18] sm:$0xff]  ;;  %v4715_v4 = vld [vmem:[#allocation4 + $0x20] sm:$0xff]  ;;  %v4719_v5 = vld [vmem:[#allocation4 + $0x28] sm:$0xff] }
  0x56   :  { %4043 = vmatprep.subr.bf16.mxu0 %v4042_v12  ;;  %v4721_v6 = vld [vmem:[#allocation4 + $0x30] sm:$0xff]  ;;  %v4725_v7 = vld [vmem:[#allocation4 + $0x38] sm:$0xff]  ;;  %v4727_v8 = vld [vmem:[#allocation4 + $0x40] sm:$0xff] }
  0x57   :  { %v4731_v9 = vld [vmem:[#allocation4 + $0x48] sm:$0xff]  ;;  %v4733_v10 = vld [vmem:[#allocation4 + $0x50] sm:$0xff]  ;;  %v4737_v11 = vld [vmem:[#allocation4 + $0x58] sm:$0xff] }
  0x58   :  { %v4743_v13 = vld [vmem:[#allocation4 + $0x68] sm:$0xff]  ;;  %v4745_v14 = vld [vmem:[#allocation4 + $0x70] sm:$0xff] }
  0x59   :  { %4045 = vmatpush3.bf16.msra.mxu0 %v4042_v12  ;;  %v4739_v12 = vld [vmem:[#allocation4 + $0x60] sm:$0xff] }
  0x5a   :  { %4047 = vmatprep.subr.bf16.mxu0 %v4046_v15 }
  0x5d   :  { %4049 = vmatpush3.bf16.msra.mxu0 %v4046_v15  ;;  %v4749_v15 = vld [vmem:[#allocation4 + $0x78] sm:$0xff] }
  0x5e   :  { %4051 = vmatprep.subr.bf16.mxu0 %v4050_v18 }
  0x61   :  { %4053 = vmatpush3.bf16.msra.mxu0 %v4050_v18 }
  0x62   :  { %4055 = vmatprep.subr.bf16.mxu0 %v4054_v21 }
  0x65   :  { %4057 = vmatpush3.bf16.msra.mxu0 %v4054_v21 }
  0x66   :  { %4059 = vmatprep.subr.bf16.mxu0 %v4058_v24 }
  0x69   :  { %4061 = vmatpush3.bf16.msra.mxu0 %v4058_v24 }
  0x6c   :  { %3391 = vmatmul.mubr.f32.vlgmr.msra.gmra.mrb[0].mxu0 %v80_v25 }
  0x6d   :  { %3393 = vmatprep.mubr.f32.mxu0 %v81_v26 }
  0x70   :  { %3394 = vmatmul.mubr.f32.gmra.mrb[2].mxu0 %v82_v27 }
  0x71   :  { %3396 = vmatprep.mubr.f32.mxu0 %v83_v28 }
  0x74   :  { %3397 = vmatmul.mubr.f32.gmra.mrb[4].mxu0 %v84_v29 }
  0x75   :  { %3399 = vmatprep.mubr.f32.mxu0 %v85_v30 }
  0x78   :  { %3400 = vmatmul.mubr.f32.gmra.mrb[6].mxu0 %v86_v31 }
  0x79   :  { %3402 = vmatprep.mubr.f32.mxu0 %v87_v32 }
  0x7c   :  { %3403 = vmatmul.mubr.f32.gmra.mrb[8].mxu0 %v88_v33 }
  0x7d   :  { %3405 = vmatprep.mubr.f32.mxu0 %v89_v34 }
  0x80   :  { %3406 = vmatmul.mubr.f32.gmra.mrb[10].mxu0 %v90_v35 }
  0x81   :  { %3408 = vmatprep.mubr.f32.mxu0 %v91_v36 }
  0x84   :  { %3409 = vmatmul.mubr.f32.gmra.mrb[12].mxu0 %v92_v37 }
  0x85   :  { %3411 = vmatprep.mubr.f32.mxu0 %v93_v38 }
  0x88   :  { %3412 = vmatmul.mubr.f32.gmra.mrb[14].mxu0 %v94_v39 }
  0x89   :  { %3502 = vmatprep.mubr.f32.mxu0 %v4655_v40 }
 0x13f   :  { %v4659_v41 = vpop.f32.mrb[0].mxu0 }
 0x140   :  { %v4661_v42 = vpop.f32.mrb[1].mxu0  ;;  %v4754_v17 = vmul.f32 0.1, %v4659_v41 }
 0x141   :  { %v4062_v43 = vpack.c.bf16 %v4659_v41, %v4661_v42  ;;  %v4757_v20 = vmul.f32 0.1, %v4661_v42 }
 0x143   :  { %v4665_v44 = vpop.f32.mrb[2].mxu0  ;;  %4063 = vmatprep.subr.bf16.mxu1 %v4062_v43 }
 0x144   :  { %v4667_v45 = vpop.f32.mrb[3].mxu0  ;;  %4065 = vmatpush3.bf16.msra.mxu1 %v4062_v43  ;;  %v4762_v25 = vmul.f32 0.1, %v4665_v44 }
 0x145   :  { %v4066_v46 = vpack.c.bf16 %v4665_v44, %v4667_v45  ;;  %v4765_v28 = vmul.f32 0.1, %v4667_v45 }
 0x147   :  { %v4671_v47 = vpop.f32.mrb[4].mxu0  ;;  %4067 = vmatprep.subr.bf16.mxu1 %v4066_v46 }
 0x148   :  { %v4673_v48 = vpop.f32.mrb[5].mxu0  ;;  %4069 = vmatpush3.bf16.msra.mxu1 %v4066_v46  ;;  %v4770_v34 = vmul.f32 0.1, %v4671_v47 }
 0x149   :  { %v4070_v49 = vpack.c.bf16 %v4671_v47, %v4673_v48  ;;  %v4773_v37 = vmul.f32 0.1, %v4673_v48 }
 0x14b   :  { %v4677_v50 = vpop.f32.mrb[6].mxu0  ;;  %4071 = vmatprep.subr.bf16.mxu1 %v4070_v49 }
 0x14c   :  { %v4679_v51 = vpop.f32.mrb[7].mxu0  ;;  %4073 = vmatpush3.bf16.msra.mxu1 %v4070_v49  ;;  %v4778_v44 = vmul.f32 0.1, %v4677_v50 }
 0x14d   :  { %v4074_v52 = vpack.c.bf16 %v4677_v50, %v4679_v51  ;;  %v4781_v47 = vmul.f32 0.1, %v4679_v51 }
 0x14f   :  { %v4683_v53 = vpop.f32.mrb[8].mxu0  ;;  %4075 = vmatprep.subr.bf16.mxu1 %v4074_v52 }
 0x150   :  { %v4685_v54 = vpop.f32.mrb[9].mxu0  ;;  %4077 = vmatpush3.bf16.msra.mxu1 %v4074_v52 }
 0x151   :  { %v4078_v55 = vpack.c.bf16 %v4683_v53, %v4685_v54 }
 0x153   :  { %v4689_v56 = vpop.f32.mrb[10].mxu0  ;;  %4079 = vmatprep.subr.bf16.mxu1 %v4078_v55 }
 0x154   :  { %v4691_v57 = vpop.f32.mrb[11].mxu0  ;;  %4081 = vmatpush3.bf16.msra.mxu1 %v4078_v55 }
 0x155   :  { %v4082_v58 = vpack.c.bf16 %v4689_v56, %v4691_v57 }
 0x157   :  { %v4695_v59 = vpop.f32.mrb[12].mxu0  ;;  %4083 = vmatprep.subr.bf16.mxu1 %v4082_v58 }
 0x158   :  { %v4697_v60 = vpop.f32.mrb[13].mxu0  ;;  %4085 = vmatpush3.bf16.msra.mxu1 %v4082_v58 }
 0x159   :  { %v4086_v61 = vpack.c.bf16 %v4695_v59, %v4697_v60 }
 0x15b   :  { %v4701_v62 = vpop.f32.mrb[14].mxu0  ;;  %4087 = vmatprep.subr.bf16.mxu1 %v4086_v61 }
 0x15c   :  { %v4703_v63 = vpop.f32.mrb[15].mxu0  ;;  %4089 = vmatpush3.bf16.msra.mxu1 %v4086_v61  ;;  %v4786_v61 = vmul.f32 0.1, %v4683_v53 }
 0x15d   :  { %v4090_v0 = vpack.c.bf16 %v4701_v62, %v4703_v63 }
 0x15f   :  { %4091 = vmatprep.subr.bf16.mxu1 %v4090_v0 }
 0x160   :  { %4093 = vmatpush3.bf16.msra.mxu1 %v4090_v0 }
 0x163   :  { %3447 = vmatmul.mubr.f32.vlgmr.msra.gmra.mrb[0].mxu1 %v4707_v1 }
 0x164   :  { %3449 = vmatprep.mubr.f32.mxu1 %v4709_v2 }
 0x167   :  { %3450 = vmatmul.mubr.f32.gmra.mrb[2].mxu1 %v4713_v3 }
 0x168   :  { %3452 = vmatprep.mubr.f32.mxu1 %v4715_v4 }
 0x16b   :  { %3453 = vmatmul.mubr.f32.gmra.mrb[4].mxu1 %v4719_v5 }
 0x16c   :  { %3455 = vmatprep.mubr.f32.mxu1 %v4721_v6 }
 0x16f   :  { %3456 = vmatmul.mubr.f32.gmra.mrb[6].mxu1 %v4725_v7 }
 0x170   :  { %3458 = vmatprep.mubr.f32.mxu1 %v4727_v8 }
 0x173   :  { %3459 = vmatmul.mubr.f32.gmra.mrb[8].mxu1 %v4731_v9 }
 0x174   :  { %3461 = vmatprep.mubr.f32.mxu1 %v4733_v10 }
 0x177   :  { %3462 = vmatmul.mubr.f32.gmra.mrb[10].mxu1 %v4737_v11 }
 0x178   :  { %3464 = vmatprep.mubr.f32.mxu1 %v4739_v12 }
 0x17b   :  { %3465 = vmatmul.mubr.f32.gmra.mrb[12].mxu1 %v4743_v13 }
 0x17c   :  { %3467 = vmatprep.mubr.f32.mxu1 %v4745_v14 }
 0x17f   :  { %3468 = vmatmul.mubr.f32.gmra.mrb[14].mxu1 %v4749_v15 }
 0x180   :  { %3558 = vmatprep.mubr.f32.mxu1 %v4655_v40 }
 0x236   :  { %v3448_v16 = vpop.f32.mrb[0].mxu1 }
 0x237   :  { %v482_v18 = vmul.f32 0.9, %v3448_v16  ;;  %v402_v19 = vpop.f32.mrb[1].mxu1  ;;  %v4789_v16 = vmul.f32 0.1, %v4685_v54 }
 0x238   :  { %v481_v21 = vmul.f32 0.9, %v402_v19 }
 0x239   :  { %v514_v22 = vadd.f32 %v482_v18, %v4754_v17 }
 0x23a   :  { %v513_v23 = vadd.f32 %v481_v21, %v4757_v20  ;;  %v3451_v24 = vpop.f32.mrb[2].mxu1 }
 0x23b   :  { %v484_v26 = vmul.f32 0.9, %v3451_v24  ;;  %v412_v27 = vpop.f32.mrb[3].mxu1 }
 0x23c   :  { %v483_v29 = vmul.f32 0.9, %v412_v27  ;;  %v4094_v30 = vpack.c.bf16 %v514_v22, %v513_v23  ;;  %v4794_v23 = vmul.f32 0.1, %v4689_v56 }
 0x23d   :  { %v516_v31 = vadd.f32 %v484_v26, %v4762_v25  ;;  %v4797_v26 = vmul.f32 0.1, %v4691_v57 }
 0x23e   :  { %v515_v32 = vadd.f32 %v483_v29, %v4765_v28  ;;  %v3454_v33 = vpop.f32.mrb[4].mxu1  ;;  %4095 = vmatprep.subr.bf16.mxu0 %v4094_v30 }
 0x23f   :  { %v486_v35 = vmul.f32 0.9, %v3454_v33  ;;  %v422_v36 = vpop.f32.mrb[5].mxu1  ;;  %4097 = vmatpush3.bf16.msra.mxu0 %v4094_v30 }
 0x240   :  { %v485_v38 = vmul.f32 0.9, %v422_v36  ;;  %v4098_v39 = vpack.c.bf16 %v516_v31, %v515_v32  ;;  %v4802_v32 = vmul.f32 0.1, %v4695_v59 }
 0x241   :  { %v518_v41 = vadd.f32 %v486_v35, %v4770_v34  ;;  %v4805_v35 = vmul.f32 0.1, %v4697_v60 }
 0x242   :  { %v517_v42 = vadd.f32 %v485_v38, %v4773_v37  ;;  %v3457_v43 = vpop.f32.mrb[6].mxu1  ;;  %4099 = vmatprep.subr.bf16.mxu0 %v4098_v39 }
 0x243   :  { %v488_v45 = vmul.f32 0.9, %v3457_v43  ;;  %v432_v46 = vpop.f32.mrb[7].mxu1  ;;  %4101 = vmatpush3.bf16.msra.mxu0 %v4098_v39 }
 0x244   :  { %v487_v49 = vmul.f32 0.9, %v432_v46  ;;  %v4102_v48 = vpack.c.bf16 %v518_v41, %v517_v42  ;;  %v4810_v42 = vmul.f32 0.1, %v4701_v62 }
 0x245   :  { %v520_v52 = vadd.f32 %v488_v45, %v4778_v44  ;;  %v4813_v45 = vmul.f32 0.1, %v4703_v63 }
 0x246   :  { %v519_v55 = vadd.f32 %v487_v49, %v4781_v47  ;;  %v3460_v58 = vpop.f32.mrb[8].mxu1  ;;  %4103 = vmatprep.subr.bf16.mxu0 %v4102_v48 }
 0x247   :  { %v490_v0 = vmul.f32 0.9, %v3460_v58  ;;  %v442_v50 = vpop.f32.mrb[9].mxu1  ;;  %4105 = vmatpush3.bf16.msra.mxu0 %v4102_v48 }
 0x248   :  { %v489_v18 = vmul.f32 0.9, %v442_v50  ;;  %v4106_v51 = vpack.c.bf16 %v520_v52, %v519_v55 }
 0x249   :  { %v522_v19 = vadd.f32 %v490_v0, %v4786_v61 }
 0x24a   :  { %v521_v21 = vadd.f32 %v489_v18, %v4789_v16  ;;  %v3463_v22 = vpop.f32.mrb[10].mxu1  ;;  %4107 = vmatprep.subr.bf16.mxu0 %v4106_v51 }
 0x24b   :  { %v492_v24 = vmul.f32 0.9, %v3463_v22  ;;  %v452_v53 = vpop.f32.mrb[11].mxu1  ;;  %4109 = vmatpush3.bf16.msra.mxu0 %v4106_v51 }
 0x24c   :  { %v491_v27 = vmul.f32 0.9, %v452_v53  ;;  %v4110_v54 = vpack.c.bf16 %v522_v19, %v521_v21 }
 0x24d   :  { %v524_v29 = vadd.f32 %v492_v24, %v4794_v23 }
 0x24e   :  { %v523_v30 = vadd.f32 %v491_v27, %v4797_v26  ;;  %v3466_v31 = vpop.f32.mrb[12].mxu1  ;;  %4111 = vmatprep.subr.bf16.mxu0 %v4110_v54 }
 0x24f   :  { %v494_v33 = vmul.f32 0.9, %v3466_v31  ;;  %v462_v56 = vpop.f32.mrb[13].mxu1  ;;  %4113 = vmatpush3.bf16.msra.mxu0 %v4110_v54 }
 0x250   :  { %v493_v36 = vmul.f32 0.9, %v462_v56  ;;  %v4114_v57 = vpack.c.bf16 %v524_v29, %v523_v30 }
 0x251   :  { %v526_v38 = vadd.f32 %v494_v33, %v4802_v32 }
 0x252   :  { %v525_v39 = vadd.f32 %v493_v36, %v4805_v35  ;;  %v3469_v41 = vpop.f32.mrb[14].mxu1  ;;  %4115 = vmatprep.subr.bf16.mxu0 %v4114_v57 }
 0x253   :  { %v496_v43 = vmul.f32 0.9, %v3469_v41  ;;  %v472_v59 = vpop.f32.mrb[15].mxu1  ;;  %4117 = vmatpush3.bf16.msra.mxu0 %v4114_v57 }
 0x254   :  { %v495_v46 = vmul.f32 0.9, %v472_v59  ;;  %v4118_v60 = vpack.c.bf16 %v526_v38, %v525_v39 }
 0x255   :  { %v528_v49 = vadd.f32 %v496_v43, %v4810_v42 }
 0x256   :  { %v527_v48 = vadd.f32 %v495_v46, %v4813_v45  ;;  %4119 = vmatprep.subr.bf16.mxu0 %v4118_v60 }
 0x257   :  { %4121 = vmatpush3.bf16.msra.mxu0 %v4118_v60 }
 0x258   :  { %v4122_v52 = vpack.c.bf16 %v528_v49, %v527_v48 }
 0x25a   :  { %4123 = vmatprep.subr.bf16.mxu0 %v4122_v52 }
 0x25b   :  { %4125 = vmatpush3.bf16.msra.mxu0 %v4122_v52 }
 0x25e   :  { %3503 = vmatmul.mubr.f32.vlgmr.msra.gmra.mrb[16].mxu0 %v4707_v1 }
 0x25f   :  { %3505 = vmatprep.mubr.f32.mxu0 %v4709_v2 }
 0x262   :  { %3506 = vmatmul.mubr.f32.gmra.mrb[18].mxu0 %v4713_v3 }
 0x263   :  { %3508 = vmatprep.mubr.f32.mxu0 %v4715_v4 }
 0x266   :  { %3509 = vmatmul.mubr.f32.gmra.mrb[20].mxu0 %v4719_v5 }
 0x267   :  { %3511 = vmatprep.mubr.f32.mxu0 %v4721_v6 }
 0x26a   :  { %3512 = vmatmul.mubr.f32.gmra.mrb[22].mxu0 %v4725_v7 }
 0x26b   :  { %3514 = vmatprep.mubr.f32.mxu0 %v4727_v8 }
 0x26e   :  { %3515 = vmatmul.mubr.f32.gmra.mrb[24].mxu0 %v4731_v9 }
 0x26f   :  { %3517 = vmatprep.mubr.f32.mxu0 %v4733_v10 }
 0x272   :  { %3518 = vmatmul.mubr.f32.gmra.mrb[26].mxu0 %v4737_v11 }
 0x273   :  { %3520 = vmatprep.mubr.f32.mxu0 %v4739_v12 }
 0x276   :  { %3521 = vmatmul.mubr.f32.gmra.mrb[28].mxu0 %v4743_v13 }
 0x277   :  { %3523 = vmatprep.mubr.f32.mxu0 %v4745_v14 }
 0x27a   :  { %3524 = vmatmul.mubr.f32.gmra.mrb[30].mxu0 %v4749_v15 }
 0x27b   :  { %3614 = vmatprep.mubr.f32.mxu0 %v4655_v40 }
 0x331   :  { %v3504_v62 = vpop.f32.mrb[16].mxu0 }
 0x332   :  { %v723_v63 = vmul.f32 0.9, %v3504_v62  ;;  %v643_v55 = vpop.f32.mrb[17].mxu0 }
 0x333   :  { %v722_v58 = vmul.f32 0.9, %v643_v55 }
 0x334   :  { %v755_v0 = vadd.f32 %v723_v63, %v4754_v17 }
 0x335   :  { %v754_v50 = vadd.f32 %v722_v58, %v4757_v20  ;;  %v3507_v18 = vpop.f32.mrb[18].mxu0 }
 0x336   :  { %v725_v51 = vmul.f32 0.9, %v3507_v18  ;;  %v653_v19 = vpop.f32.mrb[19].mxu0 }
 0x337   :  { %v724_v21 = vmul.f32 0.9, %v653_v19  ;;  %v4126_v22 = vpack.c.bf16 %v755_v0, %v754_v50 }
 0x338   :  { %v757_v24 = vadd.f32 %v725_v51, %v4762_v25 }
 0x339   :  { %v756_v53 = vadd.f32 %v724_v21, %v4765_v28  ;;  %v3510_v27 = vpop.f32.mrb[20].mxu0  ;;  %4127 = vmatprep.subr.bf16.mxu1 %v4126_v22 }
 0x33a   :  { %v727_v54 = vmul.f32 0.9, %v3510_v27  ;;  %v663_v29 = vpop.f32.mrb[21].mxu0  ;;  %4129 = vmatpush3.bf16.msra.mxu1 %v4126_v22 }
 0x33b   :  { %v726_v30 = vmul.f32 0.9, %v663_v29  ;;  %v4130_v31 = vpack.c.bf16 %v757_v24, %v756_v53 }
 0x33c   :  { %v759_v33 = vadd.f32 %v727_v54, %v4770_v34 }
 0x33d   :  { %v758_v56 = vadd.f32 %v726_v30, %v4773_v37  ;;  %v3513_v36 = vpop.f32.mrb[22].mxu0  ;;  %4131 = vmatprep.subr.bf16.mxu1 %v4130_v31 }
 0x33e   :  { %v729_v57 = vmul.f32 0.9, %v3513_v36  ;;  %v673_v38 = vpop.f32.mrb[23].mxu0  ;;  %4133 = vmatpush3.bf16.msra.mxu1 %v4130_v31 }
 0x33f   :  { %v728_v39 = vmul.f32 0.9, %v673_v38  ;;  %v4134_v41 = vpack.c.bf16 %v759_v33, %v758_v56 }
 0x340   :  { %v761_v43 = vadd.f32 %v729_v57, %v4778_v44 }
 0x341   :  { %v760_v59 = vadd.f32 %v728_v39, %v4781_v47  ;;  %v3516_v46 = vpop.f32.mrb[24].mxu0  ;;  %4135 = vmatprep.subr.bf16.mxu1 %v4134_v41 }
 0x342   :  { %v731_v60 = vmul.f32 0.9, %v3516_v46  ;;  %v683_v49 = vpop.f32.mrb[25].mxu0  ;;  %4137 = vmatpush3.bf16.msra.mxu1 %v4134_v41 }
 0x343   :  { %v730_v48 = vmul.f32 0.9, %v683_v49  ;;  %v4138_v52 = vpack.c.bf16 %v761_v43, %v760_v59 }
 0x344   :  { %v763_v62 = vadd.f32 %v731_v60, %v4786_v61 }
 0x345   :  { %v762_v63 = vadd.f32 %v730_v48, %v4789_v16  ;;  %v3519_v55 = vpop.f32.mrb[26].mxu0  ;;  %4139 = vmatprep.subr.bf16.mxu1 %v4138_v52 }
 0x346   :  { %v733_v58 = vmul.f32 0.9, %v3519_v55  ;;  %v693_v0 = vpop.f32.mrb[27].mxu0  ;;  %4141 = vmatpush3.bf16.msra.mxu1 %v4138_v52 }
 0x347   :  { %v732_v50 = vmul.f32 0.9, %v693_v0  ;;  %v4142_v18 = vpack.c.bf16 %v763_v62, %v762_v63 }
 0x348   :  { %v765_v51 = vadd.f32 %v733_v58, %v4794_v23 }
 0x349   :  { %v764_v19 = vadd.f32 %v732_v50, %v4797_v26  ;;  %v3522_v21 = vpop.f32.mrb[28].mxu0  ;;  %4143 = vmatprep.subr.bf16.mxu1 %v4142_v18 }
 0x34a   :  { %v735_v22 = vmul.f32 0.9, %v3522_v21  ;;  %v703_v24 = vpop.f32.mrb[29].mxu0  ;;  %4145 = vmatpush3.bf16.msra.mxu1 %v4142_v18 }
 0x34b   :  { %v734_v53 = vmul.f32 0.9, %v703_v24  ;;  %v4146_v27 = vpack.c.bf16 %v765_v51, %v764_v19 }
 0x34c   :  { %v767_v54 = vadd.f32 %v735_v22, %v4802_v32 }
 0x34d   :  { %v766_v29 = vadd.f32 %v734_v53, %v4805_v35  ;;  %v3525_v30 = vpop.f32.mrb[30].mxu0  ;;  %4147 = vmatprep.subr.bf16.mxu1 %v4146_v27 }
 0x34e   :  { %v737_v31 = vmul.f32 0.9, %v3525_v30  ;;  %v713_v33 = vpop.f32.mrb[31].mxu0  ;;  %4149 = vmatpush3.bf16.msra.mxu1 %v4146_v27 }
 0x34f   :  { %v736_v56 = vmul.f32 0.9, %v713_v33  ;;  %v4150_v36 = vpack.c.bf16 %v767_v54, %v766_v29 }
 0x350   :  { %v769_v57 = vadd.f32 %v737_v31, %v4810_v42 }
 0x351   :  { %v768_v38 = vadd.f32 %v736_v56, %v4813_v45  ;;  %4151 = vmatprep.subr.bf16.mxu1 %v4150_v36 }
 0x352   :  { %4153 = vmatpush3.bf16.msra.mxu1 %v4150_v36 }
 0x353   :  { %v4154_v39 = vpack.c.bf16 %v769_v57, %v768_v38 }
 0x355   :  { %4155 = vmatprep.subr.bf16.mxu1 %v4154_v39 }
 0x356   :  { %4157 = vmatpush3.bf16.msra.mxu1 %v4154_v39 }
 0x359   :  { %3559 = vmatmul.mubr.f32.vlgmr.msra.gmra.mrb[16].mxu1 %v4707_v1 }
 0x35a   :  { %3561 = vmatprep.mubr.f32.mxu1 %v4709_v2 }
 0x35d   :  { %3562 = vmatmul.mubr.f32.gmra.mrb[18].mxu1 %v4713_v3 }
 0x35e   :  { %3564 = vmatprep.mubr.f32.mxu1 %v4715_v4 }
 0x361   :  { %3565 = vmatmul.mubr.f32.gmra.mrb[20].mxu1 %v4719_v5 }
 0x362   :  { %3567 = vmatprep.mubr.f32.mxu1 %v4721_v6 }
 0x365   :  { %3568 = vmatmul.mubr.f32.gmra.mrb[22].mxu1 %v4725_v7 }
 0x366   :  { %3570 = vmatprep.mubr.f32.mxu1 %v4727_v8 }
 0x369   :  { %3571 = vmatmul.mubr.f32.gmra.mrb[24].mxu1 %v4731_v9 }
 0x36a   :  { %3573 = vmatprep.mubr.f32.mxu1 %v4733_v10 }
 0x36d   :  { %3574 = vmatmul.mubr.f32.gmra.mrb[26].mxu1 %v4737_v11 }
 0x36e   :  { %3576 = vmatprep.mubr.f32.mxu1 %v4739_v12 }
 0x371   :  { %3577 = vmatmul.mubr.f32.gmra.mrb[28].mxu1 %v4743_v13 }
 0x372   :  { %3579 = vmatprep.mubr.f32.mxu1 %v4745_v14 }
 0x375   :  { %3580 = vmatmul.mubr.f32.gmra.mrb[30].mxu1 %v4749_v15 }
 0x376   :  { %3670 = vmatprep.mubr.f32.mxu1 %v4655_v40 }
 0x42c   :  { %v3560_v41 = vpop.f32.mrb[16].mxu1 }
 0x42d   :  { %v964_v43 = vmul.f32 0.9, %v3560_v41  ;;  %v884_v59 = vpop.f32.mrb[17].mxu1 }
 0x42e   :  { %v963_v46 = vmul.f32 0.9, %v884_v59 }
 0x42f   :  { %v996_v60 = vadd.f32 %v964_v43, %v4754_v17 }
 0x430   :  { %v995_v49 = vadd.f32 %v963_v46, %v4757_v20  ;;  %v3563_v48 = vpop.f32.mrb[18].mxu1 }
 0x431   :  { %v966_v52 = vmul.f32 0.9, %v3563_v48  ;;  %v894_v62 = vpop.f32.mrb[19].mxu1 }
 0x432   :  { %v965_v63 = vmul.f32 0.9, %v894_v62  ;;  %v4158_v55 = vpack.c.bf16 %v996_v60, %v995_v49 }
 0x433   :  { %v998_v58 = vadd.f32 %v966_v52, %v4762_v25 }
 0x434   :  { %v997_v0 = vadd.f32 %v965_v63, %v4765_v28  ;;  %v3566_v50 = vpop.f32.mrb[20].mxu1  ;;  %4159 = vmatprep.subr.bf16.mxu0 %v4158_v55 }
 0x435   :  { %v968_v40 = vmul.f32 0.9, %v3566_v50  ;;  %v904_v18 = vpop.f32.mrb[21].mxu1  ;;  %4161 = vmatpush3.bf16.msra.mxu0 %v4158_v55 }
 0x436   :  { %v967_v51 = vmul.f32 0.9, %v904_v18  ;;  %v4162_v19 = vpack.c.bf16 %v998_v58, %v997_v0 }
 0x437   :  { %v1000_v21 = vadd.f32 %v968_v40, %v4770_v34 }
 0x438   :  { %v999_v22 = vadd.f32 %v967_v51, %v4773_v37  ;;  %v3569_v24 = vpop.f32.mrb[22].mxu1  ;;  %4163 = vmatprep.subr.bf16.mxu0 %v4162_v19 }
 0x439   :  { %v970_v53 = vmul.f32 0.9, %v3569_v24  ;;  %v914_v27 = vpop.f32.mrb[23].mxu1  ;;  %4165 = vmatpush3.bf16.msra.mxu0 %v4162_v19 }
 0x43a   :  { %v969_v54 = vmul.f32 0.9, %v914_v27  ;;  %v4166_v29 = vpack.c.bf16 %v1000_v21, %v999_v22 }
 0x43b   :  { %v1002_v30 = vadd.f32 %v970_v53, %v4778_v44 }
 0x43c   :  { %v1001_v31 = vadd.f32 %v969_v54, %v4781_v47  ;;  %v3572_v33 = vpop.f32.mrb[24].mxu1  ;;  %4167 = vmatprep.subr.bf16.mxu0 %v4166_v29 }
 0x43d   :  { %v972_v56 = vmul.f32 0.9, %v3572_v33  ;;  %v924_v36 = vpop.f32.mrb[25].mxu1  ;;  %4169 = vmatpush3.bf16.msra.mxu0 %v4166_v29 }
 0x43e   :  { %v971_v57 = vmul.f32 0.9, %v924_v36  ;;  %v4170_v38 = vpack.c.bf16 %v1002_v30, %v1001_v31 }
 0x43f   :  { %v1004_v39 = vadd.f32 %v972_v56, %v4786_v61 }
 0x440   :  { %v1003_v41 = vadd.f32 %v971_v57, %v4789_v16  ;;  %v3575_v43 = vpop.f32.mrb[26].mxu1  ;;  %4171 = vmatprep.subr.bf16.mxu0 %v4170_v38 }
 0x441   :  { %v974_v59 = vmul.f32 0.9, %v3575_v43  ;;  %v934_v46 = vpop.f32.mrb[27].mxu1  ;;  %4173 = vmatpush3.bf16.msra.mxu0 %v4170_v38 }
 0x442   :  { %v973_v60 = vmul.f32 0.9, %v934_v46  ;;  %v4174_v49 = vpack.c.bf16 %v1004_v39, %v1003_v41 }
 0x443   :  { %v1006_v48 = vadd.f32 %v974_v59, %v4794_v23 }
 0x444   :  { %v1005_v52 = vadd.f32 %v973_v60, %v4797_v26  ;;  %v3578_v62 = vpop.f32.mrb[28].mxu1  ;;  %4175 = vmatprep.subr.bf16.mxu0 %v4174_v49 }
 0x445   :  { %v976_v63 = vmul.f32 0.9, %v3578_v62  ;;  %v944_v55 = vpop.f32.mrb[29].mxu1  ;;  %4177 = vmatpush3.bf16.msra.mxu0 %v4174_v49 }
 0x446   :  { %v975_v58 = vmul.f32 0.9, %v944_v55  ;;  %v4178_v0 = vpack.c.bf16 %v1006_v48, %v1005_v52 }
 0x447   :  { %v1008_v50 = vadd.f32 %v976_v63, %v4802_v32 }
 0x448   :  { %v1007_v40 = vadd.f32 %v975_v58, %v4805_v35  ;;  %v3581_v18 = vpop.f32.mrb[30].mxu1  ;;  %4179 = vmatprep.subr.bf16.mxu0 %v4178_v0 }
 0x449   :  { %v978_v51 = vmul.f32 0.9, %v3581_v18  ;;  %v954_v19 = vpop.f32.mrb[31].mxu1  ;;  %4181 = vmatpush3.bf16.msra.mxu0 %v4178_v0 }
 0x44a   :  { %v977_v21 = vmul.f32 0.9, %v954_v19  ;;  %v4182_v22 = vpack.c.bf16 %v1008_v50, %v1007_v40 }
 0x44b   :  { %v1010_v24 = vadd.f32 %v978_v51, %v4810_v42 }
 0x44c   :  { %v1009_v53 = vadd.f32 %v977_v21, %v4813_v45  ;;  %4183 = vmatprep.subr.bf16.mxu0 %v4182_v22 }
 0x44d   :  { %4185 = vmatpush3.bf16.msra.mxu0 %v4182_v22 }
 0x44e   :  { %v4186_v27 = vpack.c.bf16 %v1010_v24, %v1009_v53 }
 0x450   :  { %4187 = vmatprep.subr.bf16.mxu0 %v4186_v27 }
 0x451   :  { %4189 = vmatpush3.bf16.msra.mxu0 %v4186_v27 }
 0x454   :  { %3615 = vmatmul.mubr.f32.vlgmr.msra.gmra.mrb[32].mxu0 %v4707_v1 }
 0x455   :  { %3617 = vmatprep.mubr.f32.mxu0 %v4709_v2 }
 0x458   :  { %3618 = vmatmul.mubr.f32.gmra.mrb[34].mxu0 %v4713_v3 }
 0x459   :  { %3620 = vmatprep.mubr.f32.mxu0 %v4715_v4 }
 0x45c   :  { %3621 = vmatmul.mubr.f32.gmra.mrb[36].mxu0 %v4719_v5 }
 0x45d   :  { %3623 = vmatprep.mubr.f32.mxu0 %v4721_v6 }
 0x460   :  { %3624 = vmatmul.mubr.f32.gmra.mrb[38].mxu0 %v4725_v7 }
 0x461   :  { %3626 = vmatprep.mubr.f32.mxu0 %v4727_v8 }
 0x464   :  { %3627 = vmatmul.mubr.f32.gmra.mrb[40].mxu0 %v4731_v9 }
 0x465   :  { %3629 = vmatprep.mubr.f32.mxu0 %v4733_v10 }
 0x468   :  { %3630 = vmatmul.mubr.f32.gmra.mrb[42].mxu0 %v4737_v11 }
 0x469   :  { %3632 = vmatprep.mubr.f32.mxu0 %v4739_v12 }
 0x46c   :  { %3633 = vmatmul.mubr.f32.gmra.mrb[44].mxu0 %v4743_v13 }
 0x46d   :  { %3635 = vmatprep.mubr.f32.mxu0 %v4745_v14 }
 0x470   :  { %3636 = vmatmul.mubr.f32.gmra.mrb[46].mxu0 %v4749_v15 }
 0x527   :  { %v3616_v54 = vpop.f32.mrb[32].mxu0 }
 0x528   :  { %v1205_v29 = vmul.f32 0.9, %v3616_v54  ;;  %v1125_v30 = vpop.f32.mrb[33].mxu0 }
 0x529   :  { %v1204_v31 = vmul.f32 0.9, %v1125_v30 }
 0x52a   :  { %v1237_v33 = vadd.f32 %v1205_v29, %v4754_v17 }
 0x52b   :  { %v1236_v56 = vadd.f32 %v1204_v31, %v4757_v20  ;;  %v3619_v36 = vpop.f32.mrb[34].mxu0 }
 0x52c   :  { %v1207_v57 = vmul.f32 0.9, %v3619_v36  ;;  %v1135_v38 = vpop.f32.mrb[35].mxu0 }
 0x52d   :  { %v1206_v39 = vmul.f32 0.9, %v1135_v38  ;;  %v4190_v41 = vpack.c.bf16 %v1237_v33, %v1236_v56 }
 0x52e   :  { %v1239_v43 = vadd.f32 %v1207_v57, %v4762_v25 }
 0x52f   :  { %v1238_v59 = vadd.f32 %v1206_v39, %v4765_v28  ;;  %v3622_v46 = vpop.f32.mrb[36].mxu0  ;;  %4191 = vmatprep.subr.bf16.mxu1 %v4190_v41 }
 0x530   :  { %v1209_v60 = vmul.f32 0.9, %v3622_v46  ;;  %v1145_v49 = vpop.f32.mrb[37].mxu0  ;;  %4193 = vmatpush3.bf16.msra.mxu1 %v4190_v41 }
 0x531   :  { %v1208_v48 = vmul.f32 0.9, %v1145_v49  ;;  %v4194_v52 = vpack.c.bf16 %v1239_v43, %v1238_v59 }
 0x532   :  { %v1241_v62 = vadd.f32 %v1209_v60, %v4770_v34 }
 0x533   :  { %v1240_v63 = vadd.f32 %v1208_v48, %v4773_v37  ;;  %v3625_v55 = vpop.f32.mrb[38].mxu0  ;;  %4195 = vmatprep.subr.bf16.mxu1 %v4194_v52 }
 0x534   :  { %v1211_v58 = vmul.f32 0.9, %v3625_v55  ;;  %v1155_v0 = vpop.f32.mrb[39].mxu0  ;;  %4197 = vmatpush3.bf16.msra.mxu1 %v4194_v52 }
 0x535   :  { %v1210_v50 = vmul.f32 0.9, %v1155_v0  ;;  %v4198_v40 = vpack.c.bf16 %v1241_v62, %v1240_v63 }
 0x536   :  { %v1243_v18 = vadd.f32 %v1211_v58, %v4778_v44 }
 0x537   :  { %v1242_v51 = vadd.f32 %v1210_v50, %v4781_v47  ;;  %v3628_v19 = vpop.f32.mrb[40].mxu0  ;;  %4199 = vmatprep.subr.bf16.mxu1 %v4198_v40 }
 0x538   :  { %v1213_v21 = vmul.f32 0.9, %v3628_v19  ;;  %v1165_v22 = vpop.f32.mrb[41].mxu0  ;;  %4201 = vmatpush3.bf16.msra.mxu1 %v4198_v40 }
 0x539   :  { %v1212_v24 = vmul.f32 0.9, %v1165_v22  ;;  %v4202_v53 = vpack.c.bf16 %v1243_v18, %v1242_v51 }
 0x53a   :  { %v1245_v27 = vadd.f32 %v1213_v21, %v4786_v61 }
 0x53b   :  { %v1244_v54 = vadd.f32 %v1212_v24, %v4789_v16  ;;  %v3631_v29 = vpop.f32.mrb[42].mxu0  ;;  %4203 = vmatprep.subr.bf16.mxu1 %v4202_v53 }
 0x53c   :  { %v1215_v30 = vmul.f32 0.9, %v3631_v29  ;;  %v1175_v31 = vpop.f32.mrb[43].mxu0  ;;  %4205 = vmatpush3.bf16.msra.mxu1 %v4202_v53 }
 0x53d   :  { %v1214_v33 = vmul.f32 0.9, %v1175_v31  ;;  %v4206_v56 = vpack.c.bf16 %v1245_v27, %v1244_v54 }
 0x53e   :  { %v1247_v36 = vadd.f32 %v1215_v30, %v4794_v23 }
 0x53f   :  { %v1246_v57 = vadd.f32 %v1214_v33, %v4797_v26  ;;  %v3634_v38 = vpop.f32.mrb[44].mxu0  ;;  %4207 = vmatprep.subr.bf16.mxu1 %v4206_v56 }
 0x540   :  { %v1217_v39 = vmul.f32 0.9, %v3634_v38  ;;  %v1185_v41 = vpop.f32.mrb[45].mxu0  ;;  %4209 = vmatpush3.bf16.msra.mxu1 %v4206_v56 }
 0x541   :  { %v1216_v43 = vmul.f32 0.9, %v1185_v41  ;;  %v4210_v59 = vpack.c.bf16 %v1247_v36, %v1246_v57 }
 0x542   :  { %v1249_v46 = vadd.f32 %v1217_v39, %v4802_v32 }
 0x543   :  { %v1248_v60 = vadd.f32 %v1216_v43, %v4805_v35  ;;  %v3637_v49 = vpop.f32.mrb[46].mxu0  ;;  %4211 = vmatprep.subr.bf16.mxu1 %v4210_v59 }
 0x544   :  { %v1219_v48 = vmul.f32 0.9, %v3637_v49  ;;  %v1195_v52 = vpop.f32.mrb[47].mxu0  ;;  %4213 = vmatpush3.bf16.msra.mxu1 %v4210_v59 }
 0x545   :  { %v1218_v62 = vmul.f32 0.9, %v1195_v52  ;;  %v4214_v63 = vpack.c.bf16 %v1249_v46, %v1248_v60 }
 0x546   :  { %v1251_v55 = vadd.f32 %v1219_v48, %v4810_v42 }
 0x547   :  { %v1250_v58 = vadd.f32 %v1218_v62, %v4813_v45  ;;  %4215 = vmatprep.subr.bf16.mxu1 %v4214_v63 }
 0x548   :  { %4217 = vmatpush3.bf16.msra.mxu1 %v4214_v63 }
 0x549   :  { %v4218_v0 = vpack.c.bf16 %v1251_v55, %v1250_v58 }
 0x54b   :  { %4219 = vmatprep.subr.bf16.mxu1 %v4218_v0 }
 0x54c   :  { %4221 = vmatpush3.bf16.msra.mxu1 %v4218_v0 }
 0x54f   :  { %3671 = vmatmul.mubr.f32.vlgmr.msra.gmra.mrb[32].mxu1 %v4707_v1  ;;  %v4927_v1 = vld [vmem:[#allocation4] sm:$0xff] }
 0x550   :  { %3673 = vmatprep.mubr.f32.mxu1 %v4709_v2  ;;  %3726 = vmatprep.mubr.f32.mxu0 %v4927_v1 }
 0x553   :  { %3674 = vmatmul.mubr.f32.gmra.mrb[34].mxu1 %v4713_v3 }
 0x554   :  { %3676 = vmatprep.mubr.f32.mxu1 %v4715_v4 }
 0x557   :  { %3677 = vmatmul.mubr.f32.gmra.mrb[36].mxu1 %v4719_v5 }
 0x558   :  { %3679 = vmatprep.mubr.f32.mxu1 %v4721_v6 }
 0x55b   :  { %3680 = vmatmul.mubr.f32.gmra.mrb[38].mxu1 %v4725_v7 }
 0x55c   :  { %3682 = vmatprep.mubr.f32.mxu1 %v4727_v8 }
 0x55f   :  { %3683 = vmatmul.mubr.f32.gmra.mrb[40].mxu1 %v4731_v9 }
 0x560   :  { %3685 = vmatprep.mubr.f32.mxu1 %v4733_v10 }
 0x563   :  { %3686 = vmatmul.mubr.f32.gmra.mrb[42].mxu1 %v4737_v11 }
 0x564   :  { %3688 = vmatprep.mubr.f32.mxu1 %v4739_v12 }
 0x567   :  { %3689 = vmatmul.mubr.f32.gmra.mrb[44].mxu1 %v4743_v13 }
 0x568   :  { %3691 = vmatprep.mubr.f32.mxu1 %v4745_v14 }
 0x56b   :  { %3692 = vmatmul.mubr.f32.gmra.mrb[46].mxu1 %v4749_v15 }
 0x56c   :  { %3782 = vmatprep.mubr.f32.mxu1 %v4927_v1 }
 0x622   :  { %v3672_v2 = vpop.f32.mrb[32].mxu1 }
 0x623   :  { %v1446_v3 = vmul.f32 0.9, %v3672_v2  ;;  %v1366_v4 = vpop.f32.mrb[33].mxu1 }
 0x624   :  { %v1445_v5 = vmul.f32 0.9, %v1366_v4 }
 0x625   :  { %v1478_v6 = vadd.f32 %v1446_v3, %v4754_v17 }
 0x626   :  { %v1477_v7 = vadd.f32 %v1445_v5, %v4757_v20  ;;  %v3675_v8 = vpop.f32.mrb[34].mxu1 }
 0x627   :  { %v1448_v9 = vmul.f32 0.9, %v3675_v8  ;;  %v1376_v10 = vpop.f32.mrb[35].mxu1 }
 0x628   :  { %v1447_v11 = vmul.f32 0.9, %v1376_v10  ;;  %v4222_v12 = vpack.c.bf16 %v1478_v6, %v1477_v7 }
 0x629   :  { %v1480_v13 = vadd.f32 %v1448_v9, %v4762_v25 }
 0x62a   :  { %v1479_v14 = vadd.f32 %v1447_v11, %v4765_v28  ;;  %v3678_v15 = vpop.f32.mrb[36].mxu1  ;;  %4223 = vmatprep.subr.bf16.mxu0 %v4222_v12  ;;  %v4947_v11 = vld [vmem:[#allocation4 + $0x8] sm:$0xff] }
 0x62b   :  { %v1450_v50 = vmul.f32 0.9, %v3678_v15  ;;  %v1386_v40 = vpop.f32.mrb[37].mxu1  ;;  %4225 = vmatpush3.bf16.msra.mxu0 %v4222_v12  ;;  %v4949_v12 = vld [vmem:[#allocation4 + $0x10] sm:$0xff]  ;;  %v4959_v15 = vld [vmem:[#allocation4 + $0x28] sm:$0xff] }
 0x62c   :  { %v1449_v18 = vmul.f32 0.9, %v1386_v40  ;;  %v4226_v51 = vpack.c.bf16 %v1480_v13, %v1479_v14  ;;  %v4953_v13 = vld [vmem:[#allocation4 + $0x18] sm:$0xff]  ;;  %v4955_v14 = vld [vmem:[#allocation4 + $0x20] sm:$0xff] }
 0x62d   :  { %v1482_v19 = vadd.f32 %v1450_v50, %v4770_v34  ;;  %v4961_v50 = vld [vmem:[#allocation4 + $0x30] sm:$0xff]  ;;  %v4965_v40 = vld [vmem:[#allocation4 + $0x38] sm:$0xff] }
 0x62e   :  { %v1481_v21 = vadd.f32 %v1449_v18, %v4773_v37  ;;  %v3681_v22 = vpop.f32.mrb[38].mxu1  ;;  %4227 = vmatprep.subr.bf16.mxu0 %v4226_v51  ;;  %v4967_v18 = vld [vmem:[#allocation4 + $0x40] sm:$0xff] }
 0x62f   :  { %v1452_v24 = vmul.f32 0.9, %v3681_v22  ;;  %v1396_v53 = vpop.f32.mrb[39].mxu1  ;;  %4229 = vmatpush3.bf16.msra.mxu0 %v4226_v51  ;;  %v4971_v51 = vld [vmem:[#allocation4 + $0x48] sm:$0xff]  ;;  %v4979_v22 = vld [vmem:[#allocation4 + $0x60] sm:$0xff] }
 0x630   :  { %v1451_v27 = vmul.f32 0.9, %v1396_v53  ;;  %v4230_v54 = vpack.c.bf16 %v1482_v19, %v1481_v21  ;;  %v4973_v19 = vld [vmem:[#allocation4 + $0x50] sm:$0xff]  ;;  %v4977_v21 = vld [vmem:[#allocation4 + $0x58] sm:$0xff] }
 0x631   :  { %v1484_v29 = vadd.f32 %v1452_v24, %v4778_v44  ;;  %v4983_v24 = vld [vmem:[#allocation4 + $0x68] sm:$0xff]  ;;  %v4985_v53 = vld [vmem:[#allocation4 + $0x70] sm:$0xff] }
 0x632   :  { %v1483_v30 = vadd.f32 %v1451_v27, %v4781_v47  ;;  %v3684_v31 = vpop.f32.mrb[40].mxu1  ;;  %4231 = vmatprep.subr.bf16.mxu0 %v4230_v54  ;;  %v4989_v27 = vld [vmem:[#allocation4 + $0x78] sm:$0xff] }
 0x633   :  { %v1454_v33 = vmul.f32 0.9, %v3684_v31  ;;  %v1406_v56 = vpop.f32.mrb[41].mxu1  ;;  %4233 = vmatpush3.bf16.msra.mxu0 %v4230_v54 }
 0x634   :  { %v1453_v36 = vmul.f32 0.9, %v1406_v56  ;;  %v4234_v57 = vpack.c.bf16 %v1484_v29, %v1483_v30 }
 0x635   :  { %v1486_v38 = vadd.f32 %v1454_v33, %v4786_v61 }
 0x636   :  { %v1485_v39 = vadd.f32 %v1453_v36, %v4789_v16  ;;  %v3687_v41 = vpop.f32.mrb[42].mxu1  ;;  %4235 = vmatprep.subr.bf16.mxu0 %v4234_v57 }
 0x637   :  { %v1456_v43 = vmul.f32 0.9, %v3687_v41  ;;  %v1416_v59 = vpop.f32.mrb[43].mxu1  ;;  %4237 = vmatpush3.bf16.msra.mxu0 %v4234_v57 }
 0x638   :  { %v1455_v46 = vmul.f32 0.9, %v1416_v59  ;;  %v4238_v60 = vpack.c.bf16 %v1486_v38, %v1485_v39 }
 0x639   :  { %v1488_v49 = vadd.f32 %v1456_v43, %v4794_v23 }
 0x63a   :  { %v1487_v48 = vadd.f32 %v1455_v46, %v4797_v26  ;;  %v3690_v52 = vpop.f32.mrb[44].mxu1  ;;  %4239 = vmatprep.subr.bf16.mxu0 %v4238_v60 }
 0x63b   :  { %v1458_v62 = vmul.f32 0.9, %v3690_v52  ;;  %v1426_v63 = vpop.f32.mrb[45].mxu1  ;;  %4241 = vmatpush3.bf16.msra.mxu0 %v4238_v60 }
 0x63c   :  { %v1457_v55 = vmul.f32 0.9, %v1426_v63  ;;  %v4242_v58 = vpack.c.bf16 %v1488_v49, %v1487_v48 }
 0x63d   :  { %v1490_v0 = vadd.f32 %v1458_v62, %v4802_v32 }
 0x63e   :  { %v1489_v2 = vadd.f32 %v1457_v55, %v4805_v35  ;;  %v3693_v3 = vpop.f32.mrb[46].mxu1  ;;  %4243 = vmatprep.subr.bf16.mxu0 %v4242_v58 }
 0x63f   :  { %v1460_v4 = vmul.f32 0.9, %v3693_v3  ;;  %v1436_v5 = vpop.f32.mrb[47].mxu1  ;;  %4245 = vmatpush3.bf16.msra.mxu0 %v4242_v58 }
 0x640   :  { %v1459_v6 = vmul.f32 0.9, %v1436_v5  ;;  %v4246_v7 = vpack.c.bf16 %v1490_v0, %v1489_v2 }
 0x641   :  { %v1492_v8 = vadd.f32 %v1460_v4, %v4810_v42 }
 0x642   :  { %v1491_v9 = vadd.f32 %v1459_v6, %v4813_v45  ;;  %4247 = vmatprep.subr.bf16.mxu0 %v4246_v7 }
 0x643   :  { %4249 = vmatpush3.bf16.msra.mxu0 %v4246_v7 }
 0x644   :  { %v4250_v10 = vpack.c.bf16 %v1492_v8, %v1491_v9 }
 0x646   :  { %4251 = vmatprep.subr.bf16.mxu0 %v4250_v10 }
 0x647   :  { %4253 = vmatpush3.bf16.msra.mxu0 %v4250_v10 }
 0x64a   :  { %3727 = vmatmul.mubr.f32.vlgmr.msra.gmra.mrb[48].mxu0 %v4947_v11 }
 0x64b   :  { %3729 = vmatprep.mubr.f32.mxu0 %v4949_v12 }
 0x64e   :  { %3730 = vmatmul.mubr.f32.gmra.mrb[50].mxu0 %v4953_v13 }
 0x64f   :  { %3732 = vmatprep.mubr.f32.mxu0 %v4955_v14 }
 0x652   :  { %3733 = vmatmul.mubr.f32.gmra.mrb[52].mxu0 %v4959_v15 }
 0x653   :  { %3735 = vmatprep.mubr.f32.mxu0 %v4961_v50 }
 0x656   :  { %3736 = vmatmul.mubr.f32.gmra.mrb[54].mxu0 %v4965_v40 }
 0x657   :  { %3738 = vmatprep.mubr.f32.mxu0 %v4967_v18 }
 0x65a   :  { %3739 = vmatmul.mubr.f32.gmra.mrb[56].mxu0 %v4971_v51 }
 0x65b   :  { %3741 = vmatprep.mubr.f32.mxu0 %v4973_v19 }
 0x65e   :  { %3742 = vmatmul.mubr.f32.gmra.mrb[58].mxu0 %v4977_v21 }
 0x65f   :  { %3744 = vmatprep.mubr.f32.mxu0 %v4979_v22 }
 0x662   :  { %3745 = vmatmul.mubr.f32.gmra.mrb[60].mxu0 %v4983_v24 }
 0x663   :  { %3747 = vmatprep.mubr.f32.mxu0 %v4985_v53 }
 0x666   :  { %3748 = vmatmul.mubr.f32.gmra.mrb[62].mxu0 %v4989_v27 }
 0x667   :  { %3838 = vmatprep.mubr.f32.mxu0 %v4927_v1 }
 0x71d   :  { %v3728_v54 = vpop.f32.mrb[48].mxu0 }
 0x71e   :  { %v1687_v29 = vmul.f32 0.9, %v3728_v54  ;;  %v1607_v30 = vpop.f32.mrb[49].mxu0 }
 0x71f   :  { %v1686_v31 = vmul.f32 0.9, %v1607_v30 }
 0x720   :  { %v1719_v33 = vadd.f32 %v1687_v29, %v4754_v17 }
 0x721   :  { %v1718_v56 = vadd.f32 %v1686_v31, %v4757_v20  ;;  %v3731_v36 = vpop.f32.mrb[50].mxu0 }
 0x722   :  { %v1689_v57 = vmul.f32 0.9, %v3731_v36  ;;  %v1617_v38 = vpop.f32.mrb[51].mxu0 }
 0x723   :  { %v1688_v39 = vmul.f32 0.9, %v1617_v38  ;;  %v4254_v41 = vpack.c.bf16 %v1719_v33, %v1718_v56 }
 0x724   :  { %v1721_v43 = vadd.f32 %v1689_v57, %v4762_v25 }
 0x725   :  { %v1720_v59 = vadd.f32 %v1688_v39, %v4765_v28  ;;  %v3734_v46 = vpop.f32.mrb[52].mxu0  ;;  %4255 = vmatprep.subr.bf16.mxu1 %v4254_v41 }
 0x726   :  { %v1691_v60 = vmul.f32 0.9, %v3734_v46  ;;  %v1627_v49 = vpop.f32.mrb[53].mxu0  ;;  %4257 = vmatpush3.bf16.msra.mxu1 %v4254_v41 }
 0x727   :  { %v1690_v48 = vmul.f32 0.9, %v1627_v49  ;;  %v4258_v52 = vpack.c.bf16 %v1721_v43, %v1720_v59 }
 0x728   :  { %v1723_v62 = vadd.f32 %v1691_v60, %v4770_v34 }
 0x729   :  { %v1722_v63 = vadd.f32 %v1690_v48, %v4773_v37  ;;  %v3737_v55 = vpop.f32.mrb[54].mxu0  ;;  %4259 = vmatprep.subr.bf16.mxu1 %v4258_v52 }
 0x72a   :  { %v1693_v58 = vmul.f32 0.9, %v3737_v55  ;;  %v1637_v0 = vpop.f32.mrb[55].mxu0  ;;  %4261 = vmatpush3.bf16.msra.mxu1 %v4258_v52 }
 0x72b   :  { %v1692_v2 = vmul.f32 0.9, %v1637_v0  ;;  %v4262_v3 = vpack.c.bf16 %v1723_v62, %v1722_v63 }
 0x72c   :  { %v1725_v4 = vadd.f32 %v1693_v58, %v4778_v44 }
 0x72d   :  { %v1724_v5 = vadd.f32 %v1692_v2, %v4781_v47  ;;  %v3740_v6 = vpop.f32.mrb[56].mxu0  ;;  %4263 = vmatprep.subr.bf16.mxu1 %v4262_v3 }
 0x72e   :  { %v1695_v7 = vmul.f32 0.9, %v3740_v6  ;;  %v1647_v8 = vpop.f32.mrb[57].mxu0  ;;  %4265 = vmatpush3.bf16.msra.mxu1 %v4262_v3 }
 0x72f   :  { %v1694_v9 = vmul.f32 0.9, %v1647_v8  ;;  %v4266_v10 = vpack.c.bf16 %v1725_v4, %v1724_v5 }
 0x730   :  { %v1727_v54 = vadd.f32 %v1695_v7, %v4786_v61 }
 0x731   :  { %v1726_v29 = vadd.f32 %v1694_v9, %v4789_v16  ;;  %v3743_v30 = vpop.f32.mrb[58].mxu0  ;;  %4267 = vmatprep.subr.bf16.mxu1 %v4266_v10 }
 0x732   :  { %v1697_v31 = vmul.f32 0.9, %v3743_v30  ;;  %v1657_v33 = vpop.f32.mrb[59].mxu0  ;;  %4269 = vmatpush3.bf16.msra.mxu1 %v4266_v10 }
 0x733   :  { %v1696_v56 = vmul.f32 0.9, %v1657_v33  ;;  %v4270_v36 = vpack.c.bf16 %v1727_v54, %v1726_v29 }
 0x734   :  { %v1729_v57 = vadd.f32 %v1697_v31, %v4794_v23 }
 0x735   :  { %v1728_v38 = vadd.f32 %v1696_v56, %v4797_v26  ;;  %v3746_v39 = vpop.f32.mrb[60].mxu0  ;;  %4271 = vmatprep.subr.bf16.mxu1 %v4270_v36 }
 0x736   :  { %v1699_v41 = vmul.f32 0.9, %v3746_v39  ;;  %v1667_v43 = vpop.f32.mrb[61].mxu0  ;;  %4273 = vmatpush3.bf16.msra.mxu1 %v4270_v36 }
 0x737   :  { %v1698_v59 = vmul.f32 0.9, %v1667_v43  ;;  %v4274_v46 = vpack.c.bf16 %v1729_v57, %v1728_v38 }
 0x738   :  { %v1731_v60 = vadd.f32 %v1699_v41, %v4802_v32 }
 0x739   :  { %v1730_v49 = vadd.f32 %v1698_v59, %v4805_v35  ;;  %v3749_v48 = vpop.f32.mrb[62].mxu0  ;;  %4275 = vmatprep.subr.bf16.mxu1 %v4274_v46 }
 0x73a   :  { %v1701_v52 = vmul.f32 0.9, %v3749_v48  ;;  %v1677_v62 = vpop.f32.mrb[63].mxu0  ;;  %4277 = vmatpush3.bf16.msra.mxu1 %v4274_v46 }
 0x73b   :  { %v1700_v63 = vmul.f32 0.9, %v1677_v62  ;;  %v4278_v55 = vpack.c.bf16 %v1731_v60, %v1730_v49 }
 0x73c   :  { %v1733_v58 = vadd.f32 %v1701_v52, %v4810_v42 }
 0x73d   :  { %v1732_v0 = vadd.f32 %v1700_v63, %v4813_v45  ;;  %4279 = vmatprep.subr.bf16.mxu1 %v4278_v55 }
 0x73e   :  { %4281 = vmatpush3.bf16.msra.mxu1 %v4278_v55 }
 0x73f   :  { %v4282_v2 = vpack.c.bf16 %v1733_v58, %v1732_v0 }
 0x741   :  { %4283 = vmatprep.subr.bf16.mxu1 %v4282_v2 }
 0x742   :  { %4285 = vmatpush3.bf16.msra.mxu1 %v4282_v2 }
 0x745   :  { %3783 = vmatmul.mubr.f32.vlgmr.msra.gmra.mrb[48].mxu1 %v4947_v11 }
 0x746   :  { %3785 = vmatprep.mubr.f32.mxu1 %v4949_v12 }
 0x749   :  { %3786 = vmatmul.mubr.f32.gmra.mrb[50].mxu1 %v4953_v13 }
 0x74a   :  { %3788 = vmatprep.mubr.f32.mxu1 %v4955_v14 }
 0x74d   :  { %3789 = vmatmul.mubr.f32.gmra.mrb[52].mxu1 %v4959_v15 }
 0x74e   :  { %3791 = vmatprep.mubr.f32.mxu1 %v4961_v50 }
 0x751   :  { %3792 = vmatmul.mubr.f32.gmra.mrb[54].mxu1 %v4965_v40 }
 0x752   :  { %3794 = vmatprep.mubr.f32.mxu1 %v4967_v18 }
 0x755   :  { %3795 = vmatmul.mubr.f32.gmra.mrb[56].mxu1 %v4971_v51 }
 0x756   :  { %3797 = vmatprep.mubr.f32.mxu1 %v4973_v19 }
 0x759   :  { %3798 = vmatmul.mubr.f32.gmra.mrb[58].mxu1 %v4977_v21 }
 0x75a   :  { %3800 = vmatprep.mubr.f32.mxu1 %v4979_v22 }
 0x75d   :  { %3801 = vmatmul.mubr.f32.gmra.mrb[60].mxu1 %v4983_v24 }
 0x75e   :  { %3803 = vmatprep.mubr.f32.mxu1 %v4985_v53 }
 0x761   :  { %3804 = vmatmul.mubr.f32.gmra.mrb[62].mxu1 %v4989_v27 }
 0x762   :  { %3894 = vmatprep.mubr.f32.mxu1 %v4927_v1 }
 0x818   :  { %v3784_v3 = vpop.f32.mrb[48].mxu1 }
 0x819   :  { %v1928_v4 = vmul.f32 0.9, %v3784_v3  ;;  %v1848_v5 = vpop.f32.mrb[49].mxu1 }
 0x81a   :  { %v1927_v6 = vmul.f32 0.9, %v1848_v5 }
 0x81b   :  { %v1960_v7 = vadd.f32 %v1928_v4, %v4754_v17 }
 0x81c   :  { %v1959_v8 = vadd.f32 %v1927_v6, %v4757_v20  ;;  %v3787_v9 = vpop.f32.mrb[50].mxu1 }
 0x81d   :  { %v1930_v10 = vmul.f32 0.9, %v3787_v9  ;;  %v1858_v54 = vpop.f32.mrb[51].mxu1 }
 0x81e   :  { %v1929_v29 = vmul.f32 0.9, %v1858_v54  ;;  %v4286_v30 = vpack.c.bf16 %v1960_v7, %v1959_v8 }
 0x81f   :  { %v1962_v31 = vadd.f32 %v1930_v10, %v4762_v25 }
 0x820   :  { %v1961_v33 = vadd.f32 %v1929_v29, %v4765_v28  ;;  %v3790_v56 = vpop.f32.mrb[52].mxu1  ;;  %4287 = vmatprep.subr.bf16.mxu0 %v4286_v30 }
 0x821   :  { %v1932_v36 = vmul.f32 0.9, %v3790_v56  ;;  %v1868_v57 = vpop.f32.mrb[53].mxu1  ;;  %4289 = vmatpush3.bf16.msra.mxu0 %v4286_v30 }
 0x822   :  { %v1931_v38 = vmul.f32 0.9, %v1868_v57  ;;  %v4290_v39 = vpack.c.bf16 %v1962_v31, %v1961_v33 }
 0x823   :  { %v1964_v41 = vadd.f32 %v1932_v36, %v4770_v34 }
 0x824   :  { %v1963_v43 = vadd.f32 %v1931_v38, %v4773_v37  ;;  %v3793_v59 = vpop.f32.mrb[54].mxu1  ;;  %4291 = vmatprep.subr.bf16.mxu0 %v4290_v39 }
 0x825   :  { %v1934_v46 = vmul.f32 0.9, %v3793_v59  ;;  %v1878_v60 = vpop.f32.mrb[55].mxu1  ;;  %4293 = vmatpush3.bf16.msra.mxu0 %v4290_v39 }
 0x826   :  { %v1933_v49 = vmul.f32 0.9, %v1878_v60  ;;  %v4294_v48 = vpack.c.bf16 %v1964_v41, %v1963_v43 }
 0x827   :  { %v1966_v52 = vadd.f32 %v1934_v46, %v4778_v44 }
 0x828   :  { %v1965_v62 = vadd.f32 %v1933_v49, %v4781_v47  ;;  %v3796_v63 = vpop.f32.mrb[56].mxu1  ;;  %4295 = vmatprep.subr.bf16.mxu0 %v4294_v48 }
 0x829   :  { %v1936_v55 = vmul.f32 0.9, %v3796_v63  ;;  %v1888_v58 = vpop.f32.mrb[57].mxu1  ;;  %4297 = vmatpush3.bf16.msra.mxu0 %v4294_v48 }
 0x82a   :  { %v1935_v0 = vmul.f32 0.9, %v1888_v58  ;;  %v4298_v2 = vpack.c.bf16 %v1966_v52, %v1965_v62 }
 0x82b   :  { %v1968_v3 = vadd.f32 %v1936_v55, %v4786_v61 }
 0x82c   :  { %v1967_v4 = vadd.f32 %v1935_v0, %v4789_v16  ;;  %v3799_v5 = vpop.f32.mrb[58].mxu1  ;;  %4299 = vmatprep.subr.bf16.mxu0 %v4298_v2 }
 0x82d   :  { %v1938_v6 = vmul.f32 0.9, %v3799_v5  ;;  %v1898_v7 = vpop.f32.mrb[59].mxu1  ;;  %4301 = vmatpush3.bf16.msra.mxu0 %v4298_v2 }
 0x82e   :  { %v1937_v8 = vmul.f32 0.9, %v1898_v7  ;;  %v4302_v9 = vpack.c.bf16 %v1968_v3, %v1967_v4 }
 0x82f   :  { %v1970_v10 = vadd.f32 %v1938_v6, %v4794_v23 }
 0x830   :  { %v1969_v54 = vadd.f32 %v1937_v8, %v4797_v26  ;;  %v3802_v29 = vpop.f32.mrb[60].mxu1  ;;  %4303 = vmatprep.subr.bf16.mxu0 %v4302_v9 }
 0x831   :  { %v1940_v30 = vmul.f32 0.9, %v3802_v29  ;;  %v1908_v31 = vpop.f32.mrb[61].mxu1  ;;  %4305 = vmatpush3.bf16.msra.mxu0 %v4302_v9 }
 0x832   :  { %v1939_v33 = vmul.f32 0.9, %v1908_v31  ;;  %v4306_v56 = vpack.c.bf16 %v1970_v10, %v1969_v54 }
 0x833   :  { %v1972_v36 = vadd.f32 %v1940_v30, %v4802_v32 }
 0x834   :  { %v1971_v57 = vadd.f32 %v1939_v33, %v4805_v35  ;;  %v3805_v38 = vpop.f32.mrb[62].mxu1  ;;  %4307 = vmatprep.subr.bf16.mxu0 %v4306_v56 }
 0x835   :  { %v1942_v39 = vmul.f32 0.9, %v3805_v38  ;;  %v1918_v41 = vpop.f32.mrb[63].mxu1  ;;  %4309 = vmatpush3.bf16.msra.mxu0 %v4306_v56 }
 0x836   :  { %v1941_v43 = vmul.f32 0.9, %v1918_v41  ;;  %v4310_v59 = vpack.c.bf16 %v1972_v36, %v1971_v57 }
 0x837   :  { %v1974_v46 = vadd.f32 %v1942_v39, %v4810_v42 }
 0x838   :  { %v1973_v60 = vadd.f32 %v1941_v43, %v4813_v45  ;;  %4311 = vmatprep.subr.bf16.mxu0 %v4310_v59 }
 0x839   :  { %4313 = vmatpush3.bf16.msra.mxu0 %v4310_v59 }
 0x83a   :  { %v4314_v49 = vpack.c.bf16 %v1974_v46, %v1973_v60 }
 0x83c   :  { %4315 = vmatprep.subr.bf16.mxu0 %v4314_v49 }
 0x83d   :  { %4317 = vmatpush3.bf16.msra.mxu0 %v4314_v49 }
 0x840   :  { %3839 = vmatmul.mubr.f32.vlgmr.msra.gmra.mrb[64].mxu0 %v4947_v11 }
 0x841   :  { %3841 = vmatprep.mubr.f32.mxu0 %v4949_v12 }
 0x844   :  { %3842 = vmatmul.mubr.f32.gmra.mrb[66].mxu0 %v4953_v13 }
 0x845   :  { %3844 = vmatprep.mubr.f32.mxu0 %v4955_v14 }
 0x848   :  { %3845 = vmatmul.mubr.f32.gmra.mrb[68].mxu0 %v4959_v15 }
 0x849   :  { %3847 = vmatprep.mubr.f32.mxu0 %v4961_v50 }
 0x84c   :  { %3848 = vmatmul.mubr.f32.gmra.mrb[70].mxu0 %v4965_v40 }
 0x84d   :  { %3850 = vmatprep.mubr.f32.mxu0 %v4967_v18 }
 0x850   :  { %3851 = vmatmul.mubr.f32.gmra.mrb[72].mxu0 %v4971_v51 }
 0x851   :  { %3853 = vmatprep.mubr.f32.mxu0 %v4973_v19 }
 0x854   :  { %3854 = vmatmul.mubr.f32.gmra.mrb[74].mxu0 %v4977_v21 }
 0x855   :  { %3856 = vmatprep.mubr.f32.mxu0 %v4979_v22 }
 0x858   :  { %3857 = vmatmul.mubr.f32.gmra.mrb[76].mxu0 %v4983_v24 }
 0x859   :  { %3859 = vmatprep.mubr.f32.mxu0 %v4985_v53 }
 0x85c   :  { %3860 = vmatmul.mubr.f32.gmra.mrb[78].mxu0 %v4989_v27 }
 0x85d   :  { %3950 = vmatprep.mubr.f32.mxu0 %v4927_v1 }
 0x913   :  { %v3840_v48 = vpop.f32.mrb[64].mxu0 }
 0x914   :  { %v2169_v52 = vmul.f32 0.9, %v3840_v48  ;;  %v2089_v62 = vpop.f32.mrb[65].mxu0 }
 0x915   :  { %v2168_v63 = vmul.f32 0.9, %v2089_v62 }
 0x916   :  { %v2201_v55 = vadd.f32 %v2169_v52, %v4754_v17 }
 0x917   :  { %v2200_v58 = vadd.f32 %v2168_v63, %v4757_v20  ;;  %v3843_v0 = vpop.f32.mrb[66].mxu0 }
 0x918   :  { %v2171_v2 = vmul.f32 0.9, %v3843_v0  ;;  %v2099_v3 = vpop.f32.mrb[67].mxu0 }
 0x919   :  { %v2170_v4 = vmul.f32 0.9, %v2099_v3  ;;  %v4318_v5 = vpack.c.bf16 %v2201_v55, %v2200_v58 }
 0x91a   :  { %v2203_v6 = vadd.f32 %v2171_v2, %v4762_v25 }
 0x91b   :  { %v2202_v7 = vadd.f32 %v2170_v4, %v4765_v28  ;;  %v3846_v8 = vpop.f32.mrb[68].mxu0  ;;  %4319 = vmatprep.subr.bf16.mxu1 %v4318_v5 }
 0x91c   :  { %v2173_v1 = vmul.f32 0.9, %v3846_v8  ;;  %v2109_v9 = vpop.f32.mrb[69].mxu0  ;;  %4321 = vmatpush3.bf16.msra.mxu1 %v4318_v5 }
 0x91d   :  { %v2172_v10 = vmul.f32 0.9, %v2109_v9  ;;  %v4322_v54 = vpack.c.bf16 %v2203_v6, %v2202_v7 }
 0x91e   :  { %v2205_v29 = vadd.f32 %v2173_v1, %v4770_v34 }
 0x91f   :  { %v2204_v30 = vadd.f32 %v2172_v10, %v4773_v37  ;;  %v3849_v31 = vpop.f32.mrb[70].mxu0  ;;  %4323 = vmatprep.subr.bf16.mxu1 %v4322_v54 }
 0x920   :  { %v2175_v33 = vmul.f32 0.9, %v3849_v31  ;;  %v2119_v56 = vpop.f32.mrb[71].mxu0  ;;  %4325 = vmatpush3.bf16.msra.mxu1 %v4322_v54 }
 0x921   :  { %v2174_v36 = vmul.f32 0.9, %v2119_v56  ;;  %v4326_v57 = vpack.c.bf16 %v2205_v29, %v2204_v30 }
 0x922   :  { %v2207_v38 = vadd.f32 %v2175_v33, %v4778_v44 }
 0x923   :  { %v2206_v39 = vadd.f32 %v2174_v36, %v4781_v47  ;;  %v3852_v41 = vpop.f32.mrb[72].mxu0  ;;  %4327 = vmatprep.subr.bf16.mxu1 %v4326_v57  ;;  %v2769_v36 = vld [vmem:[#allocation10] sm:$0xff] }
 0x924   :  { %v2177_v43 = vmul.f32 0.9, %v3852_v41  ;;  %v2129_v59 = vpop.f32.mrb[73].mxu0  ;;  %4329 = vmatpush3.bf16.msra.mxu1 %v4326_v57  ;;  %v2770_v57 = vld [vmem:[#allocation10 + $0x8] sm:$0xff]  ;;  %v2772_v41 = vld [vmem:[#allocation10 + $0x18] sm:$0xff] }
 0x925   :  { %v2176_v46 = vmul.f32 0.9, %v2129_v59  ;;  %v4330_v60 = vpack.c.bf16 %v2207_v38, %v2206_v39  ;;  %v2771_v38 = vld [vmem:[#allocation10 + $0x10] sm:$0xff]  ;;  %v4382_v39 = vpack.c.bf16 %v2770_v57, %v2769_v36  ;;  %v2773_v59 = vld [vmem:[#allocation10 + $0x20] sm:$0xff] }
 0x926   :  { %v2209_v49 = vadd.f32 %v2177_v43, %v4786_v61  ;;  %v4386_v43 = vpack.c.bf16 %v2772_v41, %v2771_v38 }
 0x927   :  { %v2208_v48 = vadd.f32 %v2176_v46, %v4789_v16  ;;  %v3855_v52 = vpop.f32.mrb[74].mxu0  ;;  %4331 = vmatprep.subr.bf16.mxu1 %v4330_v60  ;;  %v2774_v46 = vld [vmem:[#allocation10 + $0x28] sm:$0xff] }
 0x928   :  { %v2179_v62 = vmul.f32 0.9, %v3855_v52  ;;  %v2139_v63 = vpop.f32.mrb[75].mxu0  ;;  %4333 = vmatpush3.bf16.msra.mxu1 %v4330_v60  ;;  %v4390_v60 = vpack.c.bf16 %v2774_v46, %v2773_v59 }
 0x929   :  { %v2178_v55 = vmul.f32 0.9, %v2139_v63  ;;  %v4334_v58 = vpack.c.bf16 %v2209_v49, %v2208_v48  ;;  %v2775_v49 = vld [vmem:[#allocation10 + $0x30] sm:$0xff]  ;;  %v2776_v48 = vld [vmem:[#allocation10 + $0x38] sm:$0xff]  ;;  %v2778_v63 = vld [vmem:[#allocation10 + $0x48] sm:$0xff] }
 0x92a   :  { %v2211_v0 = vadd.f32 %v2179_v62, %v4794_v23  ;;  %v4394_v52 = vpack.c.bf16 %v2776_v48, %v2775_v49  ;;  %v2777_v62 = vld [vmem:[#allocation10 + $0x40] sm:$0xff] }
 0x92b   :  { %v2210_v2 = vadd.f32 %v2178_v55, %v4797_v26  ;;  %v3858_v3 = vpop.f32.mrb[76].mxu0  ;;  %4335 = vmatprep.subr.bf16.mxu1 %v4334_v58  ;;  %v4398_v55 = vpack.c.bf16 %v2778_v63, %v2777_v62 }
 0x92c   :  { %v2181_v4 = vmul.f32 0.9, %v3858_v3  ;;  %v2149_v5 = vpop.f32.mrb[77].mxu0  ;;  %4337 = vmatpush3.bf16.msra.mxu1 %v4334_v58  ;;  %v2779_v58 = vld [vmem:[#allocation10 + $0x50] sm:$0xff] }
 0x92d   :  { %v2180_v6 = vmul.f32 0.9, %v2149_v5  ;;  %v4338_v7 = vpack.c.bf16 %v2211_v0, %v2210_v2  ;;  %v2780_v0 = vld [vmem:[#allocation10 + $0x58] sm:$0xff] }
 0x92e   :  { %v2213_v8 = vadd.f32 %v2181_v4, %v4802_v32  ;;  %v4402_v2 = vpack.c.bf16 %v2780_v0, %v2779_v58 }
 0x92f   :  { %v2212_v1 = vadd.f32 %v2180_v6, %v4805_v35  ;;  %v3861_v9 = vpop.f32.mrb[78].mxu0  ;;  %4339 = vmatprep.subr.bf16.mxu1 %v4338_v7 }
 0x930   :  { %v2183_v10 = vmul.f32 0.9, %v3861_v9  ;;  %v2159_v54 = vpop.f32.mrb[79].mxu0  ;;  %4341 = vmatpush3.bf16.msra.mxu1 %v4338_v7 }
 0x931   :  { %v2182_v29 = vmul.f32 0.9, %v2159_v54  ;;  %v4342_v30 = vpack.c.bf16 %v2213_v8, %v2212_v1 }
 0x932   :  { %v2215_v31 = vadd.f32 %v2183_v10, %v4810_v42 }
 0x933   :  { %v2214_v33 = vadd.f32 %v2182_v29, %v4813_v45  ;;  %4343 = vmatprep.subr.bf16.mxu1 %v4342_v30 }
 0x934   :  { %4345 = vmatpush3.bf16.msra.mxu1 %v4342_v30 }
 0x935   :  { %v4346_v56 = vpack.c.bf16 %v2215_v31, %v2214_v33 }
 0x937   :  { %4347 = vmatprep.subr.bf16.mxu1 %v4346_v56 }
 0x938   :  { %4349 = vmatpush3.bf16.msra.mxu1 %v4346_v56 }
 0x939   :  { %4383 = vmatprep.subr.bf16.mxu1 %v4382_v39 }
 0x93b   :  { %3895 = vmatmul.mubr.f32.vlgmr.msra.gmra.mrb[64].mxu1 %v4947_v11 }
 0x93c   :  { %3897 = vmatprep.mubr.f32.mxu1 %v4949_v12  ;;  %4385 = vmatpush3.bf16.msra.mxu1 %v4382_v39 }
 0x93d   :  { %4387 = vmatprep.subr.bf16.mxu1 %v4386_v43 }
 0x93f   :  { %3898 = vmatmul.mubr.f32.gmra.mrb[66].mxu1 %v4953_v13 }
 0x940   :  { %3900 = vmatprep.mubr.f32.mxu1 %v4955_v14  ;;  %4389 = vmatpush3.bf16.msra.mxu1 %v4386_v43 }
 0x941   :  { %4391 = vmatprep.subr.bf16.mxu1 %v4390_v60 }
 0x943   :  { %3901 = vmatmul.mubr.f32.gmra.mrb[68].mxu1 %v4959_v15 }
 0x944   :  { %3903 = vmatprep.mubr.f32.mxu1 %v4961_v50  ;;  %4393 = vmatpush3.bf16.msra.mxu1 %v4390_v60 }
 0x945   :  { %4395 = vmatprep.subr.bf16.mxu1 %v4394_v52 }
 0x947   :  { %3904 = vmatmul.mubr.f32.gmra.mrb[70].mxu1 %v4965_v40 }
 0x948   :  { %3906 = vmatprep.mubr.f32.mxu1 %v4967_v18  ;;  %4397 = vmatpush3.bf16.msra.mxu1 %v4394_v52 }
 0x949   :  { %4399 = vmatprep.subr.bf16.mxu1 %v4398_v55 }
 0x94b   :  { %3907 = vmatmul.mubr.f32.gmra.mrb[72].mxu1 %v4971_v51 }
 0x94c   :  { %3909 = vmatprep.mubr.f32.mxu1 %v4973_v19  ;;  %4401 = vmatpush3.bf16.msra.mxu1 %v4398_v55 }
 0x94d   :  { %4403 = vmatprep.subr.bf16.mxu1 %v4402_v2 }
 0x94f   :  { %3910 = vmatmul.mubr.f32.gmra.mrb[74].mxu1 %v4977_v21 }
 0x950   :  { %3912 = vmatprep.mubr.f32.mxu1 %v4979_v22  ;;  %4405 = vmatpush3.bf16.msra.mxu1 %v4402_v2 }
 0x953   :  { %3913 = vmatmul.mubr.f32.gmra.mrb[76].mxu1 %v4983_v24 }
 0x954   :  { %3915 = vmatprep.mubr.f32.mxu1 %v4985_v53 }
 0x957   :  { %3916 = vmatmul.mubr.f32.gmra.mrb[78].mxu1 %v4989_v27 }
 0xa0e   :  { %v3896_v3 = vpop.f32.mrb[64].mxu1 }
 0xa0f   :  { %v2410_v4 = vmul.f32 0.9, %v3896_v3  ;;  %v2330_v5 = vpop.f32.mrb[65].mxu1 }
 0xa10   :  { %v2409_v6 = vmul.f32 0.9, %v2330_v5 }
 0xa11   :  { %v2442_v7 = vadd.f32 %v2410_v4, %v4754_v17 }
 0xa12   :  { %v2441_v8 = vadd.f32 %v2409_v6, %v4757_v20  ;;  %v3899_v1 = vpop.f32.mrb[66].mxu1 }
 0xa13   :  { %v2412_v9 = vmul.f32 0.9, %v3899_v1  ;;  %v2340_v10 = vpop.f32.mrb[67].mxu1 }
 0xa14   :  { %v2411_v54 = vmul.f32 0.9, %v2340_v10  ;;  %v4350_v29 = vpack.c.bf16 %v2442_v7, %v2441_v8 }
 0xa15   :  { %v2444_v30 = vadd.f32 %v2412_v9, %v4762_v25 }
 0xa16   :  { %v2443_v31 = vadd.f32 %v2411_v54, %v4765_v28  ;;  %v3902_v33 = vpop.f32.mrb[68].mxu1  ;;  %4351 = vmatprep.subr.bf16.mxu0 %v4350_v29 }
 0xa17   :  { %v2414_v56 = vmul.f32 0.9, %v3902_v33  ;;  %v2350_v36 = vpop.f32.mrb[69].mxu1  ;;  %4353 = vmatpush3.bf16.msra.mxu0 %v4350_v29 }
 0xa18   :  { %v2413_v57 = vmul.f32 0.9, %v2350_v36  ;;  %v4354_v38 = vpack.c.bf16 %v2444_v30, %v2443_v31 }
 0xa19   :  { %v2446_v39 = vadd.f32 %v2414_v56, %v4770_v34 }
 0xa1a   :  { %v2445_v41 = vadd.f32 %v2413_v57, %v4773_v37  ;;  %v3905_v43 = vpop.f32.mrb[70].mxu1  ;;  %4355 = vmatprep.subr.bf16.mxu0 %v4354_v38 }
 0xa1b   :  { %v2416_v59 = vmul.f32 0.9, %v3905_v43  ;;  %v2360_v46 = vpop.f32.mrb[71].mxu1  ;;  %4357 = vmatpush3.bf16.msra.mxu0 %v4354_v38 }
 0xa1c   :  { %v2415_v60 = vmul.f32 0.9, %v2360_v46  ;;  %v4358_v49 = vpack.c.bf16 %v2446_v39, %v2445_v41 }
 0xa1d   :  { %v2448_v48 = vadd.f32 %v2416_v59, %v4778_v44 }
 0xa1e   :  { %v2447_v52 = vadd.f32 %v2415_v60, %v4781_v47  ;;  %v3908_v62 = vpop.f32.mrb[72].mxu1  ;;  %4359 = vmatprep.subr.bf16.mxu0 %v4358_v49 }
 0xa1f   :  { %v2418_v63 = vmul.f32 0.9, %v3908_v62  ;;  %v2370_v55 = vpop.f32.mrb[73].mxu1  ;;  %4361 = vmatpush3.bf16.msra.mxu0 %v4358_v49 }
 0xa20   :  { %v2417_v58 = vmul.f32 0.9, %v2370_v55  ;;  %v4362_v0 = vpack.c.bf16 %v2448_v48, %v2447_v52 }
 0xa21   :  { %v2450_v2 = vadd.f32 %v2418_v63, %v4786_v61 }
 0xa22   :  { %v2449_v3 = vadd.f32 %v2417_v58, %v4789_v16  ;;  %v3911_v4 = vpop.f32.mrb[74].mxu1  ;;  %4363 = vmatprep.subr.bf16.mxu0 %v4362_v0 }
 0xa23   :  { %v2420_v5 = vmul.f32 0.9, %v3911_v4  ;;  %v2380_v6 = vpop.f32.mrb[75].mxu1  ;;  %4365 = vmatpush3.bf16.msra.mxu0 %v4362_v0 }
 0xa24   :  { %v2419_v7 = vmul.f32 0.9, %v2380_v6  ;;  %v4366_v8 = vpack.c.bf16 %v2450_v2, %v2449_v3 }
 0xa25   :  { %v2452_v1 = vadd.f32 %v2420_v5, %v4794_v23 }
 0xa26   :  { %v2451_v9 = vadd.f32 %v2419_v7, %v4797_v26  ;;  %v3914_v10 = vpop.f32.mrb[76].mxu1  ;;  %4367 = vmatprep.subr.bf16.mxu0 %v4366_v8 }
 0xa27   :  { %v2422_v54 = vmul.f32 0.9, %v3914_v10  ;;  %v2390_v29 = vpop.f32.mrb[77].mxu1  ;;  %4369 = vmatpush3.bf16.msra.mxu0 %v4366_v8 }
 0xa28   :  { %v2421_v30 = vmul.f32 0.9, %v2390_v29  ;;  %v4370_v31 = vpack.c.bf16 %v2452_v1, %v2451_v9 }
 0xa29   :  { %v2454_v33 = vadd.f32 %v2422_v54, %v4802_v32 }
 0xa2a   :  { %v2453_v56 = vadd.f32 %v2421_v30, %v4805_v35  ;;  %v3917_v36 = vpop.f32.mrb[78].mxu1  ;;  %4371 = vmatprep.subr.bf16.mxu0 %v4370_v31 }
 0xa2b   :  { %v2424_v57 = vmul.f32 0.9, %v3917_v36  ;;  %v2400_v38 = vpop.f32.mrb[79].mxu1  ;;  %4373 = vmatpush3.bf16.msra.mxu0 %v4370_v31 }
 0xa2c   :  { %v2423_v39 = vmul.f32 0.9, %v2400_v38  ;;  %v4374_v41 = vpack.c.bf16 %v2454_v33, %v2453_v56 }
 0xa2d   :  { %v2456_v43 = vadd.f32 %v2424_v57, %v4810_v42 }
 0xa2e   :  { %v2455_v59 = vadd.f32 %v2423_v39, %v4813_v45  ;;  %4375 = vmatprep.subr.bf16.mxu0 %v4374_v41 }
 0xa2f   :  { %4377 = vmatpush3.bf16.msra.mxu0 %v4374_v41 }
 0xa30   :  { %v4378_v46 = vpack.c.bf16 %v2456_v43, %v2455_v59 }
 0xa32   :  { %4379 = vmatprep.subr.bf16.mxu0 %v4378_v46 }
 0xa33   :  { %4381 = vmatpush3.bf16.msra.mxu0 %v4378_v46 }
 0xa36   :  { %3951 = vmatmul.mubr.f32.vlgmr.msra.gmra.mrb[80].mxu0 %v4947_v11  ;;  %v2781_v11 = vld [vmem:[#allocation10 + $0x60] sm:$0xff] }
 0xa37   :  { %3953 = vmatprep.mubr.f32.mxu0 %v4949_v12  ;;  %v2782_v12 = vld [vmem:[#allocation10 + $0x68] sm:$0xff] }
 0xa3a   :  { %3954 = vmatmul.mubr.f32.gmra.mrb[82].mxu0 %v4953_v13  ;;  %v4406_v13 = vpack.c.bf16 %v2782_v12, %v2781_v11 }
 0xa3b   :  { %3956 = vmatprep.mubr.f32.mxu0 %v4955_v14  ;;  %v2783_v14 = vld [vmem:[#allocation10 + $0x70] sm:$0xff] }
 0xa3c   :  { %4407 = vmatprep.subr.bf16.mxu1 %v4406_v13 }
 0xa3d   :  { %4409 = vmatpush3.bf16.msra.mxu1 %v4406_v13 }
 0xa3e   :  { %3957 = vmatmul.mubr.f32.gmra.mrb[84].mxu0 %v4959_v15  ;;  %v2784_v15 = vld [vmem:[#allocation10 + $0x78] sm:$0xff] }
 0xa3f   :  { %3959 = vmatprep.mubr.f32.mxu0 %v4961_v50  ;;  %v4410_v50 = vpack.c.bf16 %v2784_v15, %v2783_v14 }
 0xa41   :  { %4411 = vmatprep.subr.bf16.mxu1 %v4410_v50 }
 0xa42   :  { %3960 = vmatmul.mubr.f32.gmra.mrb[86].mxu0 %v4965_v40  ;;  %4413 = vmatpush3.bf16.msra.mxu1 %v4410_v50 }
 0xa43   :  { %3962 = vmatprep.mubr.f32.mxu0 %v4967_v18 }
 0xa46   :  { %3963 = vmatmul.mubr.f32.gmra.mrb[88].mxu0 %v4971_v51 }
 0xa47   :  { %3965 = vmatprep.mubr.f32.mxu0 %v4973_v19  ;;  %v5122_v19 = vld [vmem:[%s5177_s3] ss:$0 sm:$0xff] }
 0xa4a   :  { %3966 = vmatmul.mubr.f32.gmra.mrb[90].mxu0 %v4977_v21 }
 0xa4b   :  { %3968 = vmatprep.mubr.f32.mxu0 %v4979_v22 }
 0xa4e   :  { %3969 = vmatmul.mubr.f32.gmra.mrb[92].mxu0 %v4983_v24 }
 0xa4f   :  { %3971 = vmatprep.mubr.f32.mxu0 %v4985_v53 }
 0xa52   :  { %3972 = vmatmul.mubr.f32.gmra.mrb[94].mxu0 %v4989_v27 }
 0xb09   :  { %v3952_v40 = vpop.f32.mrb[80].mxu0 }
 0xb0a   :  { %v2651_v18 = vmul.f32 0.9, %v3952_v40  ;;  %v2571_v51 = vpop.f32.mrb[81].mxu0 }
 0xb0b   :  { %v2650_v21 = vmul.f32 0.9, %v2571_v51 }
 0xb0c   :  { %v2683_v22 = vadd.f32 %v2651_v18, %v4754_v17 }
 0xb0d   :  { %v2682_v24 = vadd.f32 %v2650_v21, %v4757_v20  ;;  %v3955_v53 = vpop.f32.mrb[82].mxu0 }
 0xb0e   :  { %v2738_v27 = vadd.f32 %v5122_v19, %v2683_v22  ;;  %v2653_v60 = vmul.f32 0.9, %v3955_v53  ;;  %v2581_v49 = vpop.f32.mrb[83].mxu0 }
 0xb0f   :  { %v2652_v48 = vmul.f32 0.9, %v2581_v49  ;;  %v2737_v52 = vadd.f32 %v5122_v19, %v2682_v24 }
 0xb10   :  { %v2685_v62 = vadd.f32 %v2653_v60, %v4762_v25  ;;  %v2754_v0 = vmax.f32 %v2738_v27, 0.0 }
 0xb11   :  { %v2684_v63 = vadd.f32 %v2652_v48, %v4765_v28  ;;  %v3958_v55 = vpop.f32.mrb[84].mxu0  ;;  %v2753_v58 = vmax.f32 %v2737_v52, 0.0 }
 0xb12   :  { %v2655_v2 = vmul.f32 0.9, %v3958_v55  ;;  %v2591_v3 = vpop.f32.mrb[85].mxu0  ;;  %v2740_v17 = vadd.f32 %v5122_v19, %v2685_v62 }
 0xb13   :  { %v2654_v20 = vmul.f32 0.9, %v2591_v3  ;;  %4006 = vmatprep.mubr.f32.mxu1 %v2753_v58  ;;  %v2739_v4 = vadd.f32 %v5122_v19, %v2684_v63 }
 0xb14   :  { %v2687_v5 = vadd.f32 %v2655_v2, %v4770_v34  ;;  %4007 = vmatmul.mubr.f32.vlgmr.msra.gmra.mrb[80].mxu1 %v2754_v0  ;;  %v2756_v1 = vmax.f32 %v2740_v17, 0.0  ;;  %v2973_v17 = vld [vmem:[%s5179_s5] ss:$0 sm:$0xff]  ;;  %s4545_s5 = smov [#allocation12]  }
 0xb15   :  { %v2686_v6 = vadd.f32 %v2654_v20, %v4773_v37  ;;  %v3961_v7 = vpop.f32.mrb[86].mxu0  ;;  %v2755_v25 = vmax.f32 %v2739_v4, 0.0  ;;  %s2958_s23 = sshll.u32 %s4545_s5, 4  ;;  %s2959_s23 = int_to_ptr.vmem [resolvable:$true] %s2958_s23 }
 0xb16   :  { %v2657_v8 = vmul.f32 0.9, %v3961_v7  ;;  %v2601_v28 = vpop.f32.mrb[87].mxu0  ;;  %v2742_v9 = vadd.f32 %v5122_v19, %v2687_v5  ;;  %s4509_s25 = scalar_lea.vmem %s2959_s23, 2048  ;;  %p4514_p5 = scmp.lt.s32.totalorder %s2959_s23, %s2959_s23 }
 0xb17   :  { %v2656_v10 = vmul.f32 0.9, %v2601_v28  ;;  %4009 = vmatprep.mubr.f32.mxu1 %v2755_v25  ;;  %v2741_v54 = vadd.f32 %v5122_v19, %v2686_v6  ;;  %p4510_p4 = scmp.ne.s32.totalorder %s2959_s23, %s4509_s25  ;;  %p4515_p6 = scmp.lt.s32.totalorder %s4509_s25, %s4509_s25 }
 0xb18   :  { %v2689_v29 = vadd.f32 %v2657_v8, %v4778_v44  ;;  %4010 = vmatmul.mubr.f32.gmra.mrb[82].mxu1 %v2756_v1  ;;  %v2758_v56 = vmax.f32 %v2742_v9, 0.0 }
 0xb19   :  { %v2688_v30 = vadd.f32 %v2656_v10, %v4781_v47  ;;  %v3964_v34 = vpop.f32.mrb[88].mxu0  ;;  %v2757_v31 = vmax.f32 %v2741_v54, 0.0  ;;  %p4516_p7 = por %p4515_p6, %p4514_p5 }
 0xb1a   :  { %v2659_v33 = vmul.f32 0.9, %v3964_v34  ;;  %v2611_v37 = vpop.f32.mrb[89].mxu0  ;;  %v2744_v36 = vadd.f32 %v5122_v19, %v2689_v29 }
 0xb1b   :  { %v2658_v57 = vmul.f32 0.9, %v2611_v37  ;;  %4012 = vmatprep.mubr.f32.mxu1 %v2757_v31  ;;  %v2743_v38 = vadd.f32 %v5122_v19, %v2688_v30  ;;  %p4517_p8 = pnand %p4516_p7, %p4510_p4 }
 0xb1c   :  { %v2691_v39 = vadd.f32 %v2659_v33, %v4786_v61  ;;  %4013 = vmatmul.mubr.f32.gmra.mrb[84].mxu1 %v2758_v56  ;;  %v2760_v46 = vmax.f32 %v2744_v36, 0.0 }
 0xb1d   :  { %v2690_v41 = vadd.f32 %v2658_v57, %v4789_v16  ;;  %v3967_v44 = vpop.f32.mrb[90].mxu0  ;;  %v2759_v43 = vmax.f32 %v2743_v38, 0.0 }
 0xb1e   :  { %v2661_v59 = vmul.f32 0.9, %v3967_v44  ;;  %v2621_v47 = vpop.f32.mrb[91].mxu0  ;;  %v2746_v11 = vadd.f32 %v5122_v19, %v2691_v39 }
 0xb1f   :  { %v2660_v12 = vmul.f32 0.9, %v2621_v47  ;;  %4015 = vmatprep.mubr.f32.mxu1 %v2759_v43  ;;  %v2745_v13 = vadd.f32 %v5122_v19, %v2690_v41 }
 0xb20   :  { %v2693_v14 = vadd.f32 %v2661_v59, %v4794_v23  ;;  %4016 = vmatmul.mubr.f32.gmra.mrb[86].mxu1 %v2760_v46  ;;  %v2762_v18 = vmax.f32 %v2746_v11, 0.0 }
 0xb21   :  { %v2692_v15 = vadd.f32 %v2660_v12, %v4797_v26  ;;  %v3970_v61 = vpop.f32.mrb[92].mxu0  ;;  %v2761_v50 = vmax.f32 %v2745_v13, 0.0 }
 0xb22   :  { %v2663_v40 = vmul.f32 0.9, %v3970_v61  ;;  %v2631_v16 = vpop.f32.mrb[93].mxu0  ;;  %v2748_v51 = vadd.f32 %v5122_v19, %v2693_v14 }
 0xb23   :  { %v2662_v21 = vmul.f32 0.9, %v2631_v16  ;;  %4018 = vmatprep.mubr.f32.mxu1 %v2761_v50  ;;  %v2747_v22 = vadd.f32 %v5122_v19, %v2692_v15 }
 0xb24   :  { %v2695_v24 = vadd.f32 %v2663_v40, %v4802_v32  ;;  %4019 = vmatmul.mubr.f32.gmra.mrb[88].mxu1 %v2762_v18  ;;  %v2764_v49 = vmax.f32 %v2748_v51, 0.0 }
 0xb25   :  { %v2694_v53 = vadd.f32 %v2662_v21, %v4805_v35  ;;  %v3973_v23 = vpop.f32.mrb[94].mxu0  ;;  %v2763_v27 = vmax.f32 %v2747_v22, 0.0 }
 0xb26   :  { %v2665_v60 = vmul.f32 0.9, %v3973_v23  ;;  %v2641_v26 = vpop.f32.mrb[95].mxu0  ;;  %v2750_v48 = vadd.f32 %v5122_v19, %v2695_v24 }
 0xb27   :  { %v2664_v52 = vmul.f32 0.9, %v2641_v26  ;;  %4021 = vmatprep.mubr.f32.mxu1 %v2763_v27  ;;  %v2749_v62 = vadd.f32 %v5122_v19, %v2694_v53 }
 0xb28   :  { %v2697_v63 = vadd.f32 %v2665_v60, %v4810_v42  ;;  %4022 = vmatmul.mubr.f32.gmra.mrb[90].mxu1 %v2764_v49  ;;  %v2766_v58 = vmax.f32 %v2750_v48, 0.0 }
 0xb29   :  { %v2696_v55 = vadd.f32 %v2664_v52, %v4813_v45  ;;  %v2765_v32 = vmax.f32 %v2749_v62, 0.0 }
 0xb2a   :  { %v2752_v35 = vadd.f32 %v5122_v19, %v2697_v63 }
 0xb2b   :  { %v2751_v0 = vadd.f32 %v5122_v19, %v2696_v55  ;;  %4024 = vmatprep.mubr.f32.mxu1 %v2765_v32 }
 0xb2c   :  { %4025 = vmatmul.mubr.f32.gmra.mrb[92].mxu1 %v2766_v58  ;;  %v2768_v3 = vmax.f32 %v2752_v35, 0.0 }
 0xb2d   :  { %v2767_v2 = vmax.f32 %v2751_v0, 0.0 }
 0xb2f   :  { %4027 = vmatprep.mubr.f32.mxu1 %v2767_v2 }
 0xb30   :  { %4028 = vmatmul.mubr.f32.gmra.mrb[94].mxu1 %v2768_v3 }
 0xbe7   :  { %v4008_v42 = vpop.f32.mrb[80].mxu1 }
 0xbe8   :  { %v2864_v20 = vadd.f32 %v4008_v42, %v2973_v17  ;;  %v2858_v4 = vpop.f32.mrb[81].mxu1 }
 0xbe9   :  { %v2859_v45 = vadd.f32 %v2973_v17, %v2858_v4 }
 0xbea   :  { %2938 = vst [vmem:[#allocation12 + $0x8] sm:$0xff] %v2864_v20 }
 0xbeb   :  { %2937 = vst [vmem:[#allocation12] sm:$0xff] %v2859_v45  ;;  %v4011_v5 = vpop.f32.mrb[82].mxu1 }
 0xbec   :  { %v2874_v6 = vadd.f32 %v4011_v5, %v2973_v17  ;;  %v2868_v7 = vpop.f32.mrb[83].mxu1 }
 0xbed   :  { %v2869_v19 = vadd.f32 %v2973_v17, %v2868_v7 }
 0xbee   :  { %2940 = vst [vmem:[#allocation12 + $0x18] sm:$0xff] %v2874_v6 }
 0xbef   :  { %2939 = vst [vmem:[#allocation12 + $0x10] sm:$0xff] %v2869_v19  ;;  %v4014_v25 = vpop.f32.mrb[84].mxu1 }
 0xbf0   :  { %v2884_v8 = vadd.f32 %v4014_v25, %v2973_v17  ;;  %v2878_v28 = vpop.f32.mrb[85].mxu1 }
 0xbf1   :  { %v2879_v1 = vadd.f32 %v2973_v17, %v2878_v28 }
 0xbf2   :  { %2942 = vst [vmem:[#allocation12 + $0x28] sm:$0xff] %v2884_v8 }
 0xbf3   :  { %2941 = vst [vmem:[#allocation12 + $0x20] sm:$0xff] %v2879_v1  ;;  %v4017_v9 = vpop.f32.mrb[86].mxu1 }
 0xbf4   :  { %v2894_v10 = vadd.f32 %v4017_v9, %v2973_v17  ;;  %v2888_v54 = vpop.f32.mrb[87].mxu1 }
 0xbf5   :  { %v2889_v29 = vadd.f32 %v2973_v17, %v2888_v54 }
 0xbf6   :  { %2944 = vst [vmem:[#allocation12 + $0x38] sm:$0xff] %v2894_v10 }
 0xbf7   :  { %2943 = vst [vmem:[#allocation12 + $0x30] sm:$0xff] %v2889_v29  ;;  %v4020_v30 = vpop.f32.mrb[88].mxu1 }
 0xbf8   :  { %v2904_v34 = vadd.f32 %v4020_v30, %v2973_v17  ;;  %v2898_v31 = vpop.f32.mrb[89].mxu1 }
 0xbf9   :  { %v2899_v33 = vadd.f32 %v2973_v17, %v2898_v31 }
 0xbfa   :  { %2946 = vst [vmem:[#allocation12 + $0x48] sm:$0xff] %v2904_v34 }
 0xbfb   :  { %2945 = vst [vmem:[#allocation12 + $0x40] sm:$0xff] %v2899_v33  ;;  %v4023_v37 = vpop.f32.mrb[90].mxu1 }
 0xbfc   :  { %v2914_v56 = vadd.f32 %v4023_v37, %v2973_v17  ;;  %v2908_v36 = vpop.f32.mrb[91].mxu1 }
 0xbfd   :  { %v2909_v57 = vadd.f32 %v2973_v17, %v2908_v36 }
 0xbfe   :  { %2948 = vst [vmem:[#allocation12 + $0x58] sm:$0xff] %v2914_v56 }
 0xbff   :  { %2947 = vst [vmem:[#allocation12 + $0x50] sm:$0xff] %v2909_v57  ;;  %v4026_v38 = vpop.f32.mrb[92].mxu1 }
 0xc00   :  { %v2924_v39 = vadd.f32 %v4026_v38, %v2973_v17  ;;  %v2918_v41 = vpop.f32.mrb[93].mxu1 }
 0xc01   :  { %v2919_v44 = vadd.f32 %v2973_v17, %v2918_v41 }
 0xc02   :  { %2950 = vst [vmem:[#allocation12 + $0x68] sm:$0xff] %v2924_v39 }
 0xc03   :  { %2949 = vst [vmem:[#allocation12 + $0x60] sm:$0xff] %v2919_v44  ;;  %v4029_v43 = vpop.f32.mrb[94].mxu1 }
 0xc04   :  { %v2934_v59 = vadd.f32 %v4029_v43, %v2973_v17  ;;  %v2928_v47 = vpop.f32.mrb[95].mxu1 }
 0xc05   :  { %v2929_v46 = vadd.f32 %v2973_v17, %v2928_v47 }
 0xc06   :  { %2952 = vst [vmem:[#allocation12 + $0x78] sm:$0xff] %v2934_v59 }
 0xc07   :  { %2951 = vst [vmem:[#allocation12 + $0x70] sm:$0xff] %v2929_v46 }
 0xc08   :  { %4520 = shalt.err (!%p4517_p8)
}
 0xc09   :  { %s4521_s28 = scalar_lea.hbm %s5180_s6, 2048 }
 0xc0a   :  { %p4522_p9 = scmp.ne.s32.totalorder %s5180_s6, %s4521_s28  ;;  %p4525_p10 = scmp.lt.u32.totalorder %s4521_s28, %s5180_s6 }
 0xc0c   :  { %p4527_p11 = pnand %p4525_p10, %p4522_p9 }
 0xc0e   :  { %4530 = shalt.err (!%p4527_p11)
}
 0xc0f   :  { %2964 = dma.vmem_to_hbm [thread:$0]  %s2959_s23, 2048, %s5180_s6, [#allocation6], %s4541_s9, %s4541_s9, %s4542_s10  }
 0xc10   :  { %4537 = dma.done.wait [#allocation6], 2048  }
 0xc11   :  { %4538 = vsyncadd [#allocation6], 4294965248 }
 0xc12   :  { %2968 = vsyncpa [#allocation5], 1 }
 0xc13   :  { %2969 = vsyncpa [#allocation8], 1 }
 0xc14   :  { %2970 = vsyncpa [#allocation11], 1 }
 0xc15   :  { %2971 = vsyncpa [#allocation6], 1 }

</bundles_post_ra>
